<compile_context>
chip_gen: v5e
topology: v5e:2x2
jax: 0.10.0
libtpu: 0.0.40
codegen_flags: <defaults>
</compile_context>

<pallas_src>
import math

import jax
import jax.numpy as jnp
from jax.experimental import pallas as pl
from jax.experimental.pallas import tpu as pltpu

# Small synthetic "BERT" config (the real module loads bert-base-uncased).
HIDDEN = 32
NUM_HEADS = 2
HEAD_DIM = HIDDEN // NUM_HEADS
INTERMEDIATE = 64
NUM_LAYERS = 2
VOCAB = 100
MAX_POS = 16
LN_EPS = 1e-12  # BERT layer-norm eps


def _layer_norm(x, gamma, beta):
    mu = jnp.mean(x, axis=-1, keepdims=True)
    xc = x - mu
    var = jnp.mean(xc * xc, axis=-1, keepdims=True)
    return xc * jax.lax.rsqrt(var + LN_EPS) * gamma + beta


# ----------------------------------------------------------------------------
# Single fused kernel: embedding LN -> NUM_LAYERS x (MHA + residual + LN,
# GELU MLP + residual + LN) -> CLS rows.  No grid; everything VMEM-resident.
# ----------------------------------------------------------------------------
def bert_stack_kernel(x_ref, mask_ref, eg_ref, eb_ref,
                      wqkv_ref, bqkv_ref, wo_ref, bo_ref, g1_ref, be1_ref,
                      w1_ref, b1_ref, w2_ref, b2_ref, g2_ref, be2_ref,
                      cls_ref):
    B, S, _ = mask_ref.shape
    BS, D = x_ref.shape

    # Hoisted once: additive (B, S, S) attention mask.
    mask = mask_ref[...]

    # Embedding layer-norm.
    h = _layer_norm(x_ref[...], eg_ref[...], eb_ref[...])          # (B*S, D)

    for li in range(NUM_LAYERS):                                   # static unroll
        # --- self-attention ---
        # Single fused QKV projection: (B*S, D) @ (D, 3D).  The 1/sqrt(dh)
        # scale is already folded into the Q columns in the wrapper.
        qkv = jnp.dot(h, wqkv_ref[li],
                      preferred_element_type=jnp.float32) + bqkv_ref[li]

        attn = jnp.zeros((BS, D), jnp.float32)
        for hi in range(NUM_HEADS):                                # static unroll
            c0 = hi * HEAD_DIM
            q = qkv[:, c0:c0 + HEAD_DIM].reshape(B, S, HEAD_DIM)
            k = qkv[:, D + c0:D + c0 + HEAD_DIM].reshape(B, S, HEAD_DIM)
            v = qkv[:, 2 * D + c0:2 * D + c0 + HEAD_DIM].reshape(B, S, HEAD_DIM)

            # Batched over the batch axis (no per-batch Python loop).
            s = jnp.einsum('bqd,bkd->bqk', q, k,
                           preferred_element_type=jnp.float32) + mask
            m = jnp.max(s, axis=-1, keepdims=True)
            p = jnp.exp(s - m)
            p = p * pl.reciprocal(jnp.sum(p, axis=-1, keepdims=True),
                                  approx=True)                     # EUP, not VPU div
            ctx = jnp.einsum('bqk,bkd->bqd', p, v,
                             preferred_element_type=jnp.float32)
            ctx = ctx.reshape(BS, HEAD_DIM)
            # Per-head row-slab of Wo, summed over heads == concat(ctx) @ Wo.
            attn = attn + jnp.dot(ctx, wo_ref[li * NUM_HEADS + hi],
                                  preferred_element_type=jnp.float32)

        h1 = _layer_norm(h + attn + bo_ref[li], g1_ref[li], be1_ref[li])

        # --- MLP ---
        ff = jnp.dot(h1, w1_ref[li], preferred_element_type=jnp.float32) + b1_ref[li]
        # TODO(synk): HF BERT uses exact erf-GELU; tanh-approx GELU is used for
        # robust Mosaic lowering (numerically very close).
        ff = jax.nn.gelu(ff, approximate=True)
        ff = jnp.dot(ff, w2_ref[li], preferred_element_type=jnp.float32) + b2_ref[li]
        h = _layer_norm(h1 + ff, g2_ref[li], be2_ref[li])

    # CLS token for each batch element (rows 0, S, 2S, ... of the flat slab).
    cls = jnp.concatenate([h[b * S:b * S + 1, :] for b in range(B)], axis=0)
    cls_ref[...] = cls.astype(cls_ref.dtype)


# ----------------------------------------------------------------------------
# Parameter init (deterministic, synthetic — the real module loads a HF
# checkpoint, which we cannot do here).
# ----------------------------------------------------------------------------
def init_params(key):
    def normal(k, shape):
        return jax.random.normal(k, shape, jnp.float32) * 0.02

    keys = jax.random.split(key, 3 + NUM_LAYERS)
    params = {
        'word_emb': normal(keys[0], (VOCAB, HIDDEN)),
        'pos_emb': normal(keys[1], (MAX_POS, HIDDEN)),
        'tok_emb': normal(keys[2], (2, HIDDEN)),
        'emb_ln_g': jnp.ones((HIDDEN,), jnp.float32),
        'emb_ln_b': jnp.zeros((HIDDEN,), jnp.float32),
        'layers': [],
    }
    for li in range(NUM_LAYERS):
        lk = jax.random.split(keys[3 + li], 6)
        params['layers'].append({
            'wq': normal(lk[0], (HIDDEN, HIDDEN)), 'bq': jnp.zeros((HIDDEN,), jnp.float32),
            'wk': normal(lk[1], (HIDDEN, HIDDEN)), 'bk': jnp.zeros((HIDDEN,), jnp.float32),
            'wv': normal(lk[2], (HIDDEN, HIDDEN)), 'bv': jnp.zeros((HIDDEN,), jnp.float32),
            'wo': normal(lk[3], (HIDDEN, HIDDEN)), 'bo': jnp.zeros((HIDDEN,), jnp.float32),
            'ln1_g': jnp.ones((HIDDEN,), jnp.float32), 'ln1_b': jnp.zeros((HIDDEN,), jnp.float32),
            'w1': normal(lk[4], (HIDDEN, INTERMEDIATE)), 'b1': jnp.zeros((INTERMEDIATE,), jnp.float32),
            'w2': normal(lk[5], (INTERMEDIATE, HIDDEN)), 'b2': jnp.zeros((HIDDEN,), jnp.float32),
            'ln2_g': jnp.ones((HIDDEN,), jnp.float32), 'ln2_b': jnp.zeros((HIDDEN,), jnp.float32),
        })
    return params


# ----------------------------------------------------------------------------
# Wrapper: stack per-layer weights into kernel-friendly slabs.
# ----------------------------------------------------------------------------
def _stack_params(params):
    scale = 1.0 / math.sqrt(HEAD_DIM)
    layers = params['layers']

    # Fused QKV weights: (L, H, 3H), column layout [Q | K | V].
    # 1/sqrt(HEAD_DIM) folded into the Q columns (weights + bias).
    wqkv = jnp.stack([jnp.concatenate([lp['wq'] * scale, lp['wk'], lp['wv']], axis=1)
                      for lp in layers])
    bqkv = jnp.stack([jnp.concatenate([lp['bq'] * scale, lp['bk'], lp['bv']]
                                      ).reshape(1, 3 * HIDDEN)
                      for lp in layers])

    def head_rows(w):   # (H, H) -> (NH, HD, H); head h = w[h*HD:(h+1)*HD, :]
        return w.reshape(NUM_HEADS, HEAD_DIM, HIDDEN)

    wo = jnp.concatenate([head_rows(lp['wo']) for lp in layers], axis=0)  # (L*NH, HD, H)
    bo = jnp.stack([lp['bo'].reshape(1, HIDDEN) for lp in layers])
    g1 = jnp.stack([lp['ln1_g'].reshape(1, HIDDEN) for lp in layers])
    be1 = jnp.stack([lp['ln1_b'].reshape(1, HIDDEN) for lp in layers])
    w1 = jnp.stack([lp['w1'] for lp in layers])
    b1 = jnp.stack([lp['b1'].reshape(1, INTERMEDIATE) for lp in layers])
    w2 = jnp.stack([lp['w2'] for lp in layers])
    b2 = jnp.stack([lp['b2'].reshape(1, HIDDEN) for lp in layers])
    g2 = jnp.stack([lp['ln2_g'].reshape(1, HIDDEN) for lp in layers])
    be2 = jnp.stack([lp['ln2_b'].reshape(1, HIDDEN) for lp in layers])
    return (wqkv, bqkv, wo, bo, g1, be1, w1, b1, w2, b2, g2, be2)


# ----------------------------------------------------------------------------
# Full forward: embedding gathers (plain JAX glue) -> single fused Pallas
# kernel -> CLS embedding, i.e. last_hidden_state[:, 0, :].
# ----------------------------------------------------------------------------
def text_encoder_forward(params, input_ids, attention_mask):
    B, S = input_ids.shape
    # Embedding lookups (data-dependent gathers) stay in plain JAX.
    word = params['word_emb'][input_ids]                   # (B, S, H)
    pos = params['pos_emb'][:S][None, :, :]                # (1, S, H)
    tok = params['tok_emb'][0][None, None, :]              # token_type_ids = 0
    emb = (word + pos + tok).reshape(B * S, HIDDEN)

    # HF-style additive mask, materialized once as (B, S, S).
    mask_bias = (1.0 - attention_mask.astype(jnp.float32)) * -10000.0
    mask_bias = jnp.broadcast_to(mask_bias[:, None, :], (B, S, S))

    args = (emb, mask_bias,
            params['emb_ln_g'].reshape(1, HIDDEN),
            params['emb_ln_b'].reshape(1, HIDDEN),
            *_stack_params(params))

    vmem = pl.BlockSpec(memory_space=pltpu.MemorySpace.VMEM)
    cls = pl.pallas_call(
        bert_stack_kernel,
        out_shape=jax.ShapeDtypeStruct((B, HIDDEN), jnp.float32),
        in_specs=[vmem] * len(args),
        out_specs=vmem,
    )(*args)
    return cls                                             # (B, H) CLS token


if __name__ == "__main__":
    key = jax.random.PRNGKey(0)
    pkey, ikey = jax.random.split(key)
    params = init_params(pkey)

    B, S = 2, 8
    input_ids = jax.random.randint(ikey, (B, S), 0, VOCAB, dtype=jnp.int32)
    attention_mask = jnp.array(
        [[1] * S, [1] * (S - 2) + [0, 0]], dtype=jnp.int32)   # 2nd row padded

    fwd = jax.jit(text_encoder_forward)
    out = fwd(params, input_ids, attention_mask)
    jax.block_until_ready(out)
    assert out.shape == (B, HIDDEN) and out.dtype == jnp.float32
    assert bool(jnp.all(jnp.isfinite(out)))
    print("KERNEL_OK")
</pallas_src>

<mosaic_0001>
module attributes {stable_mosaic.version = 11 : i64} {
  func.func @bert_stack_kernel(%arg0: memref<16x32xf32, #tpu.memory_space<vmem>>, %arg1: memref<2x8x8xf32, #tpu.memory_space<vmem>>, %arg2: memref<1x32xf32, #tpu.memory_space<vmem>>, %arg3: memref<1x32xf32, #tpu.memory_space<vmem>>, %arg4: memref<2x32x96xf32, #tpu.memory_space<vmem>>, %arg5: memref<2x1x96xf32, #tpu.memory_space<vmem>>, %arg6: memref<4x16x32xf32, #tpu.memory_space<vmem>>, %arg7: memref<2x1x32xf32, #tpu.memory_space<vmem>>, %arg8: memref<2x1x32xf32, #tpu.memory_space<vmem>>, %arg9: memref<2x1x32xf32, #tpu.memory_space<vmem>>, %arg10: memref<2x32x64xf32, #tpu.memory_space<vmem>>, %arg11: memref<2x1x64xf32, #tpu.memory_space<vmem>>, %arg12: memref<2x64x32xf32, #tpu.memory_space<vmem>>, %arg13: memref<2x1x32xf32, #tpu.memory_space<vmem>>, %arg14: memref<2x1x32xf32, #tpu.memory_space<vmem>>, %arg15: memref<2x1x32xf32, #tpu.memory_space<vmem>>, %arg16: memref<2x32xf32, #tpu.memory_space<vmem>>) attributes {dimension_semantics = [], scalar_prefetch = 0 : i64, scratch_operands = 0 : i64, tpu.core_type = #tpu.core_type<tc>} {
    %c0 = arith.constant 0 : index
    %c0_0 = arith.constant 0 : index
    %c0_1 = arith.constant 0 : index
    %0 = vector.load %arg1[%c0, %c0_0, %c0_1] : memref<2x8x8xf32, #tpu.memory_space<vmem>>, vector<2x8x8xf32>
    %c0_2 = arith.constant 0 : index
    %c0_3 = arith.constant 0 : index
    %1 = vector.load %arg0[%c0_2, %c0_3] : memref<16x32xf32, #tpu.memory_space<vmem>>, vector<16x32xf32>
    %c0_4 = arith.constant 0 : index
    %c0_5 = arith.constant 0 : index
    %2 = vector.load %arg2[%c0_4, %c0_5] : memref<1x32xf32, #tpu.memory_space<vmem>>, vector<1x32xf32>
    %c0_6 = arith.constant 0 : index
    %c0_7 = arith.constant 0 : index
    %3 = vector.load %arg3[%c0_6, %c0_7] : memref<1x32xf32, #tpu.memory_space<vmem>>, vector<1x32xf32>
    %cst = arith.constant dense<0.000000e+00> : vector<16xf32>
    %4 = vector.multi_reduction <add>, %1, %cst [1] : vector<16x32xf32> to vector<16xf32>
    %5 = vector.shape_cast %4 : vector<16xf32> to vector<16x1xf32>
    %cst_8 = arith.constant 3.200000e+01 : f32
    %6 = vector.broadcast %cst_8 : f32 to vector<16x1xf32>
    %7 = arith.divf %5, %6 : vector<16x1xf32>
    %8 = vector.broadcast %7 : vector<16x1xf32> to vector<16x32xf32>
    %9 = arith.subf %1, %8 : vector<16x32xf32>
    %10 = arith.mulf %9, %9 : vector<16x32xf32>
    %cst_9 = arith.constant dense<0.000000e+00> : vector<16xf32>
    %11 = vector.multi_reduction <add>, %10, %cst_9 [1] : vector<16x32xf32> to vector<16xf32>
    %12 = vector.shape_cast %11 : vector<16xf32> to vector<16x1xf32>
    %cst_10 = arith.constant 3.200000e+01 : f32
    %13 = vector.broadcast %cst_10 : f32 to vector<16x1xf32>
    %14 = arith.divf %12, %13 : vector<16x1xf32>
    %cst_11 = arith.constant 9.99999996E-13 : f32
    %15 = vector.broadcast %cst_11 : f32 to vector<16x1xf32>
    %16 = arith.addf %14, %15 : vector<16x1xf32>
    %17 = math.rsqrt %16 : vector<16x1xf32>
    %18 = vector.broadcast %17 : vector<16x1xf32> to vector<16x32xf32>
    %19 = arith.mulf %9, %18 : vector<16x32xf32>
    %20 = vector.broadcast %2 : vector<1x32xf32> to vector<16x32xf32>
    %21 = arith.mulf %19, %20 : vector<16x32xf32>
    %22 = vector.broadcast %3 : vector<1x32xf32> to vector<16x32xf32>
    %23 = arith.addf %21, %22 : vector<16x32xf32>
    %c0_12 = arith.constant 0 : index
    %c0_13 = arith.constant 0 : index
    %c0_14 = arith.constant 0 : index
    %24 = vector.load %arg4[%c0_12, %c0_13, %c0_14] : memref<2x32x96xf32, #tpu.memory_space<vmem>>, vector<1x32x96xf32>
    %25 = vector.shape_cast %24 : vector<1x32x96xf32> to vector<32x96xf32>
    %cst_15 = arith.constant dense<0.000000e+00> : vector<16x96xf32>
    %26 = tpu.matmul %23, %25, %cst_15 {dimension_numbers = #tpu.dot_dimension_numbers<[1], [0], [0], [1], [0, 0, 1, 1], [], []>} : vector<16x32xf32>, vector<32x96xf32>, vector<16x96xf32> -> vector<16x96xf32>
    %c0_16 = arith.constant 0 : index
    %c0_17 = arith.constant 0 : index
    %c0_18 = arith.constant 0 : index
    %27 = vector.load %arg5[%c0_16, %c0_17, %c0_18] : memref<2x1x96xf32, #tpu.memory_space<vmem>>, vector<1x1x96xf32>
    %28 = vector.shape_cast %27 : vector<1x1x96xf32> to vector<1x96xf32>
    %29 = vector.broadcast %28 : vector<1x96xf32> to vector<16x96xf32>
    %30 = arith.addf %26, %29 : vector<16x96xf32>
    %cst_19 = arith.constant 0.000000e+00 : f32
    %31 = vector.broadcast %cst_19 : f32 to vector<16x32xf32>
    %32 = vector.extract_strided_slice %30 {offsets = [0, 0], sizes = [16, 16], strides = [1, 1]} : vector<16x96xf32> to vector<16x16xf32>
    %33 = vector.shape_cast %32 : vector<16x16xf32> to vector<2x8x16xf32>
    %34 = vector.extract_strided_slice %30 {offsets = [0, 32], sizes = [16, 16], strides = [1, 1]} : vector<16x96xf32> to vector<16x16xf32>
    %35 = vector.shape_cast %34 : vector<16x16xf32> to vector<2x8x16xf32>
    %36 = vector.extract_strided_slice %30 {offsets = [0, 64], sizes = [16, 16], strides = [1, 1]} : vector<16x96xf32> to vector<16x16xf32>
    %37 = vector.shape_cast %36 : vector<16x16xf32> to vector<2x8x16xf32>
    "tpu.trace_start"() <{level = 10 : i32, message = "bqd,bkd->bqk"}> : () -> ()
    %cst_20 = arith.constant dense<0.000000e+00> : vector<2x8x8xf32>
    %38 = tpu.matmul %33, %35, %cst_20 {dimension_numbers = #tpu.dot_dimension_numbers<[2], [2], [1], [1], [0, 0, 0, 1, 1, 1], [0], [0]>} : vector<2x8x16xf32>, vector<2x8x16xf32>, vector<2x8x8xf32> -> vector<2x8x8xf32>
    "tpu.trace_stop"() : () -> ()
    %39 = arith.addf %38, %0 : vector<2x8x8xf32>
    %cst_21 = arith.constant dense<0xFF800000> : vector<2x8xf32>
    %40 = vector.multi_reduction <maximumf>, %39, %cst_21 [2] : vector<2x8x8xf32> to vector<2x8xf32>
    %41 = vector.shape_cast %40 : vector<2x8xf32> to vector<2x8x1xf32>
    %42 = vector.broadcast %41 : vector<2x8x1xf32> to vector<2x8x8xf32>
    %43 = arith.subf %39, %42 : vector<2x8x8xf32>
    %44 = math.exp %43 : vector<2x8x8xf32>
    %cst_22 = arith.constant dense<0.000000e+00> : vector<2x8xf32>
    %45 = vector.multi_reduction <add>, %44, %cst_22 [2] : vector<2x8x8xf32> to vector<2x8xf32>
    %46 = vector.shape_cast %45 : vector<2x8xf32> to vector<2x8x1xf32>
    %47 = tpu.reciprocal %46 {approx = true} : vector<2x8x1xf32> -> vector<2x8x1xf32>
    %48 = vector.broadcast %47 : vector<2x8x1xf32> to vector<2x8x8xf32>
    %49 = arith.mulf %44, %48 : vector<2x8x8xf32>
    "tpu.trace_start"() <{level = 10 : i32, message = "bqk,bkd->bqd"}> : () -> ()
    %cst_23 = arith.constant dense<0.000000e+00> : vector<2x8x16xf32>
    %50 = tpu.matmul %49, %37, %cst_23 {dimension_numbers = #tpu.dot_dimension_numbers<[2], [1], [1], [2], [0, 0, 0, 1, 1, 2], [0], [0]>} : vector<2x8x8xf32>, vector<2x8x16xf32>, vector<2x8x16xf32> -> vector<2x8x16xf32>
    "tpu.trace_stop"() : () -> ()
    %51 = vector.shape_cast %50 : vector<2x8x16xf32> to vector<16x16xf32>
    %c0_24 = arith.constant 0 : index
    %c0_25 = arith.constant 0 : index
    %c0_26 = arith.constant 0 : index
    %52 = vector.load %arg6[%c0_24, %c0_25, %c0_26] : memref<4x16x32xf32, #tpu.memory_space<vmem>>, vector<1x16x32xf32>
    %53 = vector.shape_cast %52 : vector<1x16x32xf32> to vector<16x32xf32>
    %cst_27 = arith.constant dense<0.000000e+00> : vector<16x32xf32>
    %54 = tpu.matmul %51, %53, %cst_27 {dimension_numbers = #tpu.dot_dimension_numbers<[1], [0], [0], [1], [0, 0, 1, 1], [], []>} : vector<16x16xf32>, vector<16x32xf32>, vector<16x32xf32> -> vector<16x32xf32>
    %55 = arith.addf %31, %54 : vector<16x32xf32>
    %56 = vector.extract_strided_slice %30 {offsets = [0, 16], sizes = [16, 16], strides = [1, 1]} : vector<16x96xf32> to vector<16x16xf32>
    %57 = vector.shape_cast %56 : vector<16x16xf32> to vector<2x8x16xf32>
    %58 = vector.extract_strided_slice %30 {offsets = [0, 48], sizes = [16, 16], strides = [1, 1]} : vector<16x96xf32> to vector<16x16xf32>
    %59 = vector.shape_cast %58 : vector<16x16xf32> to vector<2x8x16xf32>
    %60 = vector.extract_strided_slice %30 {offsets = [0, 80], sizes = [16, 16], strides = [1, 1]} : vector<16x96xf32> to vector<16x16xf32>
    %61 = vector.shape_cast %60 : vector<16x16xf32> to vector<2x8x16xf32>
    "tpu.trace_start"() <{level = 10 : i32, message = "bqd,bkd->bqk"}> : () -> ()
    %cst_28 = arith.constant dense<0.000000e+00> : vector<2x8x8xf32>
    %62 = tpu.matmul %57, %59, %cst_28 {dimension_numbers = #tpu.dot_dimension_numbers<[2], [2], [1], [1], [0, 0, 0, 1, 1, 1], [0], [0]>} : vector<2x8x16xf32>, vector<2x8x16xf32>, vector<2x8x8xf32> -> vector<2x8x8xf32>
    "tpu.trace_stop"() : () -> ()
    %63 = arith.addf %62, %0 : vector<2x8x8xf32>
    %cst_29 = arith.constant dense<0xFF800000> : vector<2x8xf32>
    %64 = vector.multi_reduction <maximumf>, %63, %cst_29 [2] : vector<2x8x8xf32> to vector<2x8xf32>
    %65 = vector.shape_cast %64 : vector<2x8xf32> to vector<2x8x1xf32>
    %66 = vector.broadcast %65 : vector<2x8x1xf32> to vector<2x8x8xf32>
    %67 = arith.subf %63, %66 : vector<2x8x8xf32>
    %68 = math.exp %67 : vector<2x8x8xf32>
    %cst_30 = arith.constant dense<0.000000e+00> : vector<2x8xf32>
    %69 = vector.multi_reduction <add>, %68, %cst_30 [2] : vector<2x8x8xf32> to vector<2x8xf32>
    %70 = vector.shape_cast %69 : vector<2x8xf32> to vector<2x8x1xf32>
    %71 = tpu.reciprocal %70 {approx = true} : vector<2x8x1xf32> -> vector<2x8x1xf32>
    %72 = vector.broadcast %71 : vector<2x8x1xf32> to vector<2x8x8xf32>
    %73 = arith.mulf %68, %72 : vector<2x8x8xf32>
    "tpu.trace_start"() <{level = 10 : i32, message = "bqk,bkd->bqd"}> : () -> ()
    %cst_31 = arith.constant dense<0.000000e+00> : vector<2x8x16xf32>
    %74 = tpu.matmul %73, %61, %cst_31 {dimension_numbers = #tpu.dot_dimension_numbers<[2], [1], [1], [2], [0, 0, 0, 1, 1, 2], [0], [0]>} : vector<2x8x8xf32>, vector<2x8x16xf32>, vector<2x8x16xf32> -> vector<2x8x16xf32>
    "tpu.trace_stop"() : () -> ()
    %75 = vector.shape_cast %74 : vector<2x8x16xf32> to vector<16x16xf32>
    %c1 = arith.constant 1 : index
    %c0_32 = arith.constant 0 : index
    %c0_33 = arith.constant 0 : index
    %76 = vector.load %arg6[%c1, %c0_32, %c0_33] : memref<4x16x32xf32, #tpu.memory_space<vmem>>, vector<1x16x32xf32>
    %77 = vector.shape_cast %76 : vector<1x16x32xf32> to vector<16x32xf32>
    %cst_34 = arith.constant dense<0.000000e+00> : vector<16x32xf32>
    %78 = tpu.matmul %75, %77, %cst_34 {dimension_numbers = #tpu.dot_dimension_numbers<[1], [0], [0], [1], [0, 0, 1, 1], [], []>} : vector<16x16xf32>, vector<16x32xf32>, vector<16x32xf32> -> vector<16x32xf32>
    %79 = arith.addf %55, %78 : vector<16x32xf32>
    %80 = arith.addf %23, %79 : vector<16x32xf32>
    %c0_35 = arith.constant 0 : index
    %c0_36 = arith.constant 0 : index
    %c0_37 = arith.constant 0 : index
    %81 = vector.load %arg7[%c0_35, %c0_36, %c0_37] : memref<2x1x32xf32, #tpu.memory_space<vmem>>, vector<1x1x32xf32>
    %82 = vector.shape_cast %81 : vector<1x1x32xf32> to vector<1x32xf32>
    %83 = vector.broadcast %82 : vector<1x32xf32> to vector<16x32xf32>
    %84 = arith.addf %80, %83 : vector<16x32xf32>
    %c0_38 = arith.constant 0 : index
    %c0_39 = arith.constant 0 : index
    %c0_40 = arith.constant 0 : index
    %85 = vector.load %arg8[%c0_38, %c0_39, %c0_40] : memref<2x1x32xf32, #tpu.memory_space<vmem>>, vector<1x1x32xf32>
    %86 = vector.shape_cast %85 : vector<1x1x32xf32> to vector<1x32xf32>
    %c0_41 = arith.constant 0 : index
    %c0_42 = arith.constant 0 : index
    %c0_43 = arith.constant 0 : index
    %87 = vector.load %arg9[%c0_41, %c0_42, %c0_43] : memref<2x1x32xf32, #tpu.memory_space<vmem>>, vector<1x1x32xf32>
    %88 = vector.shape_cast %87 : vector<1x1x32xf32> to vector<1x32xf32>
    %cst_44 = arith.constant dense<0.000000e+00> : vector<16xf32>
    %89 = vector.multi_reduction <add>, %84, %cst_44 [1] : vector<16x32xf32> to vector<16xf32>
    %90 = vector.shape_cast %89 : vector<16xf32> to vector<16x1xf32>
    %cst_45 = arith.constant 3.200000e+01 : f32
    %91 = vector.broadcast %cst_45 : f32 to vector<16x1xf32>
    %92 = arith.divf %90, %91 : vector<16x1xf32>
    %93 = vector.broadcast %92 : vector<16x1xf32> to vector<16x32xf32>
    %94 = arith.subf %84, %93 : vector<16x32xf32>
    %95 = arith.mulf %94, %94 : vector<16x32xf32>
    %cst_46 = arith.constant dense<0.000000e+00> : vector<16xf32>
    %96 = vector.multi_reduction <add>, %95, %cst_46 [1] : vector<16x32xf32> to vector<16xf32>
    %97 = vector.shape_cast %96 : vector<16xf32> to vector<16x1xf32>
    %cst_47 = arith.constant 3.200000e+01 : f32
    %98 = vector.broadcast %cst_47 : f32 to vector<16x1xf32>
    %99 = arith.divf %97, %98 : vector<16x1xf32>
    %cst_48 = arith.constant 9.99999996E-13 : f32
    %100 = vector.broadcast %cst_48 : f32 to vector<16x1xf32>
    %101 = arith.addf %99, %100 : vector<16x1xf32>
    %102 = math.rsqrt %101 : vector<16x1xf32>
    %103 = vector.broadcast %102 : vector<16x1xf32> to vector<16x32xf32>
    %104 = arith.mulf %94, %103 : vector<16x32xf32>
    %105 = vector.broadcast %86 : vector<1x32xf32> to vector<16x32xf32>
    %106 = arith.mulf %104, %105 : vector<16x32xf32>
    %107 = vector.broadcast %88 : vector<1x32xf32> to vector<16x32xf32>
    %108 = arith.addf %106, %107 : vector<16x32xf32>
    %c0_49 = arith.constant 0 : index
    %c0_50 = arith.constant 0 : index
    %c0_51 = arith.constant 0 : index
    %109 = vector.load %arg10[%c0_49, %c0_50, %c0_51] : memref<2x32x64xf32, #tpu.memory_space<vmem>>, vector<1x32x64xf32>
    %110 = vector.shape_cast %109 : vector<1x32x64xf32> to vector<32x64xf32>
    %cst_52 = arith.constant dense<0.000000e+00> : vector<16x64xf32>
    %111 = tpu.matmul %108, %110, %cst_52 {dimension_numbers = #tpu.dot_dimension_numbers<[1], [0], [0], [1], [0, 0, 1, 1], [], []>} : vector<16x32xf32>, vector<32x64xf32>, vector<16x64xf32> -> vector<16x64xf32>
    %c0_53 = arith.constant 0 : index
    %c0_54 = arith.constant 0 : index
    %c0_55 = arith.constant 0 : index
    %112 = vector.load %arg11[%c0_53, %c0_54, %c0_55] : memref<2x1x64xf32, #tpu.memory_space<vmem>>, vector<1x1x64xf32>
    %113 = vector.shape_cast %112 : vector<1x1x64xf32> to vector<1x64xf32>
    %114 = vector.broadcast %113 : vector<1x64xf32> to vector<16x64xf32>
    %115 = arith.addf %111, %114 : vector<16x64xf32>
    %116 = arith.mulf %115, %115 : vector<16x64xf32>
    %117 = arith.mulf %115, %116 : vector<16x64xf32>
    %cst_56 = arith.constant 4.471500e-02 : f32
    %118 = vector.broadcast %cst_56 : f32 to vector<16x64xf32>
    %119 = arith.mulf %118, %117 : vector<16x64xf32>
    %120 = arith.addf %115, %119 : vector<16x64xf32>
    %cst_57 = arith.constant 0.797884583 : f32
    %121 = vector.broadcast %cst_57 : f32 to vector<16x64xf32>
    %122 = arith.mulf %121, %120 : vector<16x64xf32>
    %123 = math.tanh %122 : vector<16x64xf32>
    %cst_58 = arith.constant 1.000000e+00 : f32
    %124 = vector.broadcast %cst_58 : f32 to vector<16x64xf32>
    %125 = arith.addf %124, %123 : vector<16x64xf32>
    %cst_59 = arith.constant 5.000000e-01 : f32
    %126 = vector.broadcast %cst_59 : f32 to vector<16x64xf32>
    %127 = arith.mulf %126, %125 : vector<16x64xf32>
    %128 = arith.mulf %115, %127 : vector<16x64xf32>
    %c0_60 = arith.constant 0 : index
    %c0_61 = arith.constant 0 : index
    %c0_62 = arith.constant 0 : index
    %129 = vector.load %arg12[%c0_60, %c0_61, %c0_62] : memref<2x64x32xf32, #tpu.memory_space<vmem>>, vector<1x64x32xf32>
    %130 = vector.shape_cast %129 : vector<1x64x32xf32> to vector<64x32xf32>
    %cst_63 = arith.constant dense<0.000000e+00> : vector<16x32xf32>
    %131 = tpu.matmul %128, %130, %cst_63 {dimension_numbers = #tpu.dot_dimension_numbers<[1], [0], [0], [1], [0, 0, 1, 1], [], []>} : vector<16x64xf32>, vector<64x32xf32>, vector<16x32xf32> -> vector<16x32xf32>
    %c0_64 = arith.constant 0 : index
    %c0_65 = arith.constant 0 : index
    %c0_66 = arith.constant 0 : index
    %132 = vector.load %arg13[%c0_64, %c0_65, %c0_66] : memref<2x1x32xf32, #tpu.memory_space<vmem>>, vector<1x1x32xf32>
    %133 = vector.shape_cast %132 : vector<1x1x32xf32> to vector<1x32xf32>
    %134 = vector.broadcast %133 : vector<1x32xf32> to vector<16x32xf32>
    %135 = arith.addf %131, %134 : vector<16x32xf32>
    %136 = arith.addf %108, %135 : vector<16x32xf32>
    %c0_67 = arith.constant 0 : index
    %c0_68 = arith.constant 0 : index
    %c0_69 = arith.constant 0 : index
    %137 = vector.load %arg14[%c0_67, %c0_68, %c0_69] : memref<2x1x32xf32, #tpu.memory_space<vmem>>, vector<1x1x32xf32>
    %138 = vector.shape_cast %137 : vector<1x1x32xf32> to vector<1x32xf32>
    %c0_70 = arith.constant 0 : index
    %c0_71 = arith.constant 0 : index
    %c0_72 = arith.constant 0 : index
    %139 = vector.load %arg15[%c0_70, %c0_71, %c0_72] : memref<2x1x32xf32, #tpu.memory_space<vmem>>, vector<1x1x32xf32>
    %140 = vector.shape_cast %139 : vector<1x1x32xf32> to vector<1x32xf32>
    %cst_73 = arith.constant dense<0.000000e+00> : vector<16xf32>
    %141 = vector.multi_reduction <add>, %136, %cst_73 [1] : vector<16x32xf32> to vector<16xf32>
    %142 = vector.shape_cast %141 : vector<16xf32> to vector<16x1xf32>
    %cst_74 = arith.constant 3.200000e+01 : f32
    %143 = vector.broadcast %cst_74 : f32 to vector<16x1xf32>
    %144 = arith.divf %142, %143 : vector<16x1xf32>
    %145 = vector.broadcast %144 : vector<16x1xf32> to vector<16x32xf32>
    %146 = arith.subf %136, %145 : vector<16x32xf32>
    %147 = arith.mulf %146, %146 : vector<16x32xf32>
    %cst_75 = arith.constant dense<0.000000e+00> : vector<16xf32>
    %148 = vector.multi_reduction <add>, %147, %cst_75 [1] : vector<16x32xf32> to vector<16xf32>
    %149 = vector.shape_cast %148 : vector<16xf32> to vector<16x1xf32>
    %cst_76 = arith.constant 3.200000e+01 : f32
    %150 = vector.broadcast %cst_76 : f32 to vector<16x1xf32>
    %151 = arith.divf %149, %150 : vector<16x1xf32>
    %cst_77 = arith.constant 9.99999996E-13 : f32
    %152 = vector.broadcast %cst_77 : f32 to vector<16x1xf32>
    %153 = arith.addf %151, %152 : vector<16x1xf32>
    %154 = math.rsqrt %153 : vector<16x1xf32>
    %155 = vector.broadcast %154 : vector<16x1xf32> to vector<16x32xf32>
    %156 = arith.mulf %146, %155 : vector<16x32xf32>
    %157 = vector.broadcast %138 : vector<1x32xf32> to vector<16x32xf32>
    %158 = arith.mulf %156, %157 : vector<16x32xf32>
    %159 = vector.broadcast %140 : vector<1x32xf32> to vector<16x32xf32>
    %160 = arith.addf %158, %159 : vector<16x32xf32>
    %c1_78 = arith.constant 1 : index
    %c0_79 = arith.constant 0 : index
    %c0_80 = arith.constant 0 : index
    %161 = vector.load %arg4[%c1_78, %c0_79, %c0_80] : memref<2x32x96xf32, #tpu.memory_space<vmem>>, vector<1x32x96xf32>
    %162 = vector.shape_cast %161 : vector<1x32x96xf32> to vector<32x96xf32>
    %cst_81 = arith.constant dense<0.000000e+00> : vector<16x96xf32>
    %163 = tpu.matmul %160, %162, %cst_81 {dimension_numbers = #tpu.dot_dimension_numbers<[1], [0], [0], [1], [0, 0, 1, 1], [], []>} : vector<16x32xf32>, vector<32x96xf32>, vector<16x96xf32> -> vector<16x96xf32>
    %c1_82 = arith.constant 1 : index
    %c0_83 = arith.constant 0 : index
    %c0_84 = arith.constant 0 : index
    %164 = vector.load %arg5[%c1_82, %c0_83, %c0_84] : memref<2x1x96xf32, #tpu.memory_space<vmem>>, vector<1x1x96xf32>
    %165 = vector.shape_cast %164 : vector<1x1x96xf32> to vector<1x96xf32>
    %166 = vector.broadcast %165 : vector<1x96xf32> to vector<16x96xf32>
    %167 = arith.addf %163, %166 : vector<16x96xf32>
    %cst_85 = arith.constant 0.000000e+00 : f32
    %168 = vector.broadcast %cst_85 : f32 to vector<16x32xf32>
    %169 = vector.extract_strided_slice %167 {offsets = [0, 0], sizes = [16, 16], strides = [1, 1]} : vector<16x96xf32> to vector<16x16xf32>
    %170 = vector.shape_cast %169 : vector<16x16xf32> to vector<2x8x16xf32>
    %171 = vector.extract_strided_slice %167 {offsets = [0, 32], sizes = [16, 16], strides = [1, 1]} : vector<16x96xf32> to vector<16x16xf32>
    %172 = vector.shape_cast %171 : vector<16x16xf32> to vector<2x8x16xf32>
    %173 = vector.extract_strided_slice %167 {offsets = [0, 64], sizes = [16, 16], strides = [1, 1]} : vector<16x96xf32> to vector<16x16xf32>
    %174 = vector.shape_cast %173 : vector<16x16xf32> to vector<2x8x16xf32>
    "tpu.trace_start"() <{level = 10 : i32, message = "bqd,bkd->bqk"}> : () -> ()
    %cst_86 = arith.constant dense<0.000000e+00> : vector<2x8x8xf32>
    %175 = tpu.matmul %170, %172, %cst_86 {dimension_numbers = #tpu.dot_dimension_numbers<[2], [2], [1], [1], [0, 0, 0, 1, 1, 1], [0], [0]>} : vector<2x8x16xf32>, vector<2x8x16xf32>, vector<2x8x8xf32> -> vector<2x8x8xf32>
    "tpu.trace_stop"() : () -> ()
    %176 = arith.addf %175, %0 : vector<2x8x8xf32>
    %cst_87 = arith.constant dense<0xFF800000> : vector<2x8xf32>
    %177 = vector.multi_reduction <maximumf>, %176, %cst_87 [2] : vector<2x8x8xf32> to vector<2x8xf32>
    %178 = vector.shape_cast %177 : vector<2x8xf32> to vector<2x8x1xf32>
    %179 = vector.broadcast %178 : vector<2x8x1xf32> to vector<2x8x8xf32>
    %180 = arith.subf %176, %179 : vector<2x8x8xf32>
    %181 = math.exp %180 : vector<2x8x8xf32>
    %cst_88 = arith.constant dense<0.000000e+00> : vector<2x8xf32>
    %182 = vector.multi_reduction <add>, %181, %cst_88 [2] : vector<2x8x8xf32> to vector<2x8xf32>
    %183 = vector.shape_cast %182 : vector<2x8xf32> to vector<2x8x1xf32>
    %184 = tpu.reciprocal %183 {approx = true} : vector<2x8x1xf32> -> vector<2x8x1xf32>
    %185 = vector.broadcast %184 : vector<2x8x1xf32> to vector<2x8x8xf32>
    %186 = arith.mulf %181, %185 : vector<2x8x8xf32>
    "tpu.trace_start"() <{level = 10 : i32, message = "bqk,bkd->bqd"}> : () -> ()
    %cst_89 = arith.constant dense<0.000000e+00> : vector<2x8x16xf32>
    %187 = tpu.matmul %186, %174, %cst_89 {dimension_numbers = #tpu.dot_dimension_numbers<[2], [1], [1], [2], [0, 0, 0, 1, 1, 2], [0], [0]>} : vector<2x8x8xf32>, vector<2x8x16xf32>, vector<2x8x16xf32> -> vector<2x8x16xf32>
    "tpu.trace_stop"() : () -> ()
    %188 = vector.shape_cast %187 : vector<2x8x16xf32> to vector<16x16xf32>
    %c2 = arith.constant 2 : index
    %c0_90 = arith.constant 0 : index
    %c0_91 = arith.constant 0 : index
    %189 = vector.load %arg6[%c2, %c0_90, %c0_91] : memref<4x16x32xf32, #tpu.memory_space<vmem>>, vector<1x16x32xf32>
    %190 = vector.shape_cast %189 : vector<1x16x32xf32> to vector<16x32xf32>
    %cst_92 = arith.constant dense<0.000000e+00> : vector<16x32xf32>
    %191 = tpu.matmul %188, %190, %cst_92 {dimension_numbers = #tpu.dot_dimension_numbers<[1], [0], [0], [1], [0, 0, 1, 1], [], []>} : vector<16x16xf32>, vector<16x32xf32>, vector<16x32xf32> -> vector<16x32xf32>
    %192 = arith.addf %168, %191 : vector<16x32xf32>
    %193 = vector.extract_strided_slice %167 {offsets = [0, 16], sizes = [16, 16], strides = [1, 1]} : vector<16x96xf32> to vector<16x16xf32>
    %194 = vector.shape_cast %193 : vector<16x16xf32> to vector<2x8x16xf32>
    %195 = vector.extract_strided_slice %167 {offsets = [0, 48], sizes = [16, 16], strides = [1, 1]} : vector<16x96xf32> to vector<16x16xf32>
    %196 = vector.shape_cast %195 : vector<16x16xf32> to vector<2x8x16xf32>
    %197 = vector.extract_strided_slice %167 {offsets = [0, 80], sizes = [16, 16], strides = [1, 1]} : vector<16x96xf32> to vector<16x16xf32>
    %198 = vector.shape_cast %197 : vector<16x16xf32> to vector<2x8x16xf32>
    "tpu.trace_start"() <{level = 10 : i32, message = "bqd,bkd->bqk"}> : () -> ()
    %cst_93 = arith.constant dense<0.000000e+00> : vector<2x8x8xf32>
    %199 = tpu.matmul %194, %196, %cst_93 {dimension_numbers = #tpu.dot_dimension_numbers<[2], [2], [1], [1], [0, 0, 0, 1, 1, 1], [0], [0]>} : vector<2x8x16xf32>, vector<2x8x16xf32>, vector<2x8x8xf32> -> vector<2x8x8xf32>
    "tpu.trace_stop"() : () -> ()
    %200 = arith.addf %199, %0 : vector<2x8x8xf32>
    %cst_94 = arith.constant dense<0xFF800000> : vector<2x8xf32>
    %201 = vector.multi_reduction <maximumf>, %200, %cst_94 [2] : vector<2x8x8xf32> to vector<2x8xf32>
    %202 = vector.shape_cast %201 : vector<2x8xf32> to vector<2x8x1xf32>
    %203 = vector.broadcast %202 : vector<2x8x1xf32> to vector<2x8x8xf32>
    %204 = arith.subf %200, %203 : vector<2x8x8xf32>
    %205 = math.exp %204 : vector<2x8x8xf32>
    %cst_95 = arith.constant dense<0.000000e+00> : vector<2x8xf32>
    %206 = vector.multi_reduction <add>, %205, %cst_95 [2] : vector<2x8x8xf32> to vector<2x8xf32>
    %207 = vector.shape_cast %206 : vector<2x8xf32> to vector<2x8x1xf32>
    %208 = tpu.reciprocal %207 {approx = true} : vector<2x8x1xf32> -> vector<2x8x1xf32>
    %209 = vector.broadcast %208 : vector<2x8x1xf32> to vector<2x8x8xf32>
    %210 = arith.mulf %205, %209 : vector<2x8x8xf32>
    "tpu.trace_start"() <{level = 10 : i32, message = "bqk,bkd->bqd"}> : () -> ()
    %cst_96 = arith.constant dense<0.000000e+00> : vector<2x8x16xf32>
    %211 = tpu.matmul %210, %198, %cst_96 {dimension_numbers = #tpu.dot_dimension_numbers<[2], [1], [1], [2], [0, 0, 0, 1, 1, 2], [0], [0]>} : vector<2x8x8xf32>, vector<2x8x16xf32>, vector<2x8x16xf32> -> vector<2x8x16xf32>
    "tpu.trace_stop"() : () -> ()
    %212 = vector.shape_cast %211 : vector<2x8x16xf32> to vector<16x16xf32>
    %c3 = arith.constant 3 : index
    %c0_97 = arith.constant 0 : index
    %c0_98 = arith.constant 0 : index
    %213 = vector.load %arg6[%c3, %c0_97, %c0_98] : memref<4x16x32xf32, #tpu.memory_space<vmem>>, vector<1x16x32xf32>
    %214 = vector.shape_cast %213 : vector<1x16x32xf32> to vector<16x32xf32>
    %cst_99 = arith.constant dense<0.000000e+00> : vector<16x32xf32>
    %215 = tpu.matmul %212, %214, %cst_99 {dimension_numbers = #tpu.dot_dimension_numbers<[1], [0], [0], [1], [0, 0, 1, 1], [], []>} : vector<16x16xf32>, vector<16x32xf32>, vector<16x32xf32> -> vector<16x32xf32>
    %216 = arith.addf %192, %215 : vector<16x32xf32>
    %217 = arith.addf %160, %216 : vector<16x32xf32>
    %c1_100 = arith.constant 1 : index
    %c0_101 = arith.constant 0 : index
    %c0_102 = arith.constant 0 : index
    %218 = vector.load %arg7[%c1_100, %c0_101, %c0_102] : memref<2x1x32xf32, #tpu.memory_space<vmem>>, vector<1x1x32xf32>
    %219 = vector.shape_cast %218 : vector<1x1x32xf32> to vector<1x32xf32>
    %220 = vector.broadcast %219 : vector<1x32xf32> to vector<16x32xf32>
    %221 = arith.addf %217, %220 : vector<16x32xf32>
    %c1_103 = arith.constant 1 : index
    %c0_104 = arith.constant 0 : index
    %c0_105 = arith.constant 0 : index
    %222 = vector.load %arg8[%c1_103, %c0_104, %c0_105] : memref<2x1x32xf32, #tpu.memory_space<vmem>>, vector<1x1x32xf32>
    %223 = vector.shape_cast %222 : vector<1x1x32xf32> to vector<1x32xf32>
    %c1_106 = arith.constant 1 : index
    %c0_107 = arith.constant 0 : index
    %c0_108 = arith.constant 0 : index
    %224 = vector.load %arg9[%c1_106, %c0_107, %c0_108] : memref<2x1x32xf32, #tpu.memory_space<vmem>>, vector<1x1x32xf32>
    %225 = vector.shape_cast %224 : vector<1x1x32xf32> to vector<1x32xf32>
    %cst_109 = arith.constant dense<0.000000e+00> : vector<16xf32>
    %226 = vector.multi_reduction <add>, %221, %cst_109 [1] : vector<16x32xf32> to vector<16xf32>
    %227 = vector.shape_cast %226 : vector<16xf32> to vector<16x1xf32>
    %cst_110 = arith.constant 3.200000e+01 : f32
    %228 = vector.broadcast %cst_110 : f32 to vector<16x1xf32>
    %229 = arith.divf %227, %228 : vector<16x1xf32>
    %230 = vector.broadcast %229 : vector<16x1xf32> to vector<16x32xf32>
    %231 = arith.subf %221, %230 : vector<16x32xf32>
    %232 = arith.mulf %231, %231 : vector<16x32xf32>
    %cst_111 = arith.constant dense<0.000000e+00> : vector<16xf32>
    %233 = vector.multi_reduction <add>, %232, %cst_111 [1] : vector<16x32xf32> to vector<16xf32>
    %234 = vector.shape_cast %233 : vector<16xf32> to vector<16x1xf32>
    %cst_112 = arith.constant 3.200000e+01 : f32
    %235 = vector.broadcast %cst_112 : f32 to vector<16x1xf32>
    %236 = arith.divf %234, %235 : vector<16x1xf32>
    %cst_113 = arith.constant 9.99999996E-13 : f32
    %237 = vector.broadcast %cst_113 : f32 to vector<16x1xf32>
    %238 = arith.addf %236, %237 : vector<16x1xf32>
    %239 = math.rsqrt %238 : vector<16x1xf32>
    %240 = vector.broadcast %239 : vector<16x1xf32> to vector<16x32xf32>
    %241 = arith.mulf %231, %240 : vector<16x32xf32>
    %242 = vector.broadcast %223 : vector<1x32xf32> to vector<16x32xf32>
    %243 = arith.mulf %241, %242 : vector<16x32xf32>
    %244 = vector.broadcast %225 : vector<1x32xf32> to vector<16x32xf32>
    %245 = arith.addf %243, %244 : vector<16x32xf32>
    %c1_114 = arith.constant 1 : index
    %c0_115 = arith.constant 0 : index
    %c0_116 = arith.constant 0 : index
    %246 = vector.load %arg10[%c1_114, %c0_115, %c0_116] : memref<2x32x64xf32, #tpu.memory_space<vmem>>, vector<1x32x64xf32>
    %247 = vector.shape_cast %246 : vector<1x32x64xf32> to vector<32x64xf32>
    %cst_117 = arith.constant dense<0.000000e+00> : vector<16x64xf32>
    %248 = tpu.matmul %245, %247, %cst_117 {dimension_numbers = #tpu.dot_dimension_numbers<[1], [0], [0], [1], [0, 0, 1, 1], [], []>} : vector<16x32xf32>, vector<32x64xf32>, vector<16x64xf32> -> vector<16x64xf32>
    %c1_118 = arith.constant 1 : index
    %c0_119 = arith.constant 0 : index
    %c0_120 = arith.constant 0 : index
    %249 = vector.load %arg11[%c1_118, %c0_119, %c0_120] : memref<2x1x64xf32, #tpu.memory_space<vmem>>, vector<1x1x64xf32>
    %250 = vector.shape_cast %249 : vector<1x1x64xf32> to vector<1x64xf32>
    %251 = vector.broadcast %250 : vector<1x64xf32> to vector<16x64xf32>
    %252 = arith.addf %248, %251 : vector<16x64xf32>
    %253 = arith.mulf %252, %252 : vector<16x64xf32>
    %254 = arith.mulf %252, %253 : vector<16x64xf32>
    %cst_121 = arith.constant 4.471500e-02 : f32
    %255 = vector.broadcast %cst_121 : f32 to vector<16x64xf32>
    %256 = arith.mulf %255, %254 : vector<16x64xf32>
    %257 = arith.addf %252, %256 : vector<16x64xf32>
    %cst_122 = arith.constant 0.797884583 : f32
    %258 = vector.broadcast %cst_122 : f32 to vector<16x64xf32>
    %259 = arith.mulf %258, %257 : vector<16x64xf32>
    %260 = math.tanh %259 : vector<16x64xf32>
    %cst_123 = arith.constant 1.000000e+00 : f32
    %261 = vector.broadcast %cst_123 : f32 to vector<16x64xf32>
    %262 = arith.addf %261, %260 : vector<16x64xf32>
    %cst_124 = arith.constant 5.000000e-01 : f32
    %263 = vector.broadcast %cst_124 : f32 to vector<16x64xf32>
    %264 = arith.mulf %263, %262 : vector<16x64xf32>
    %265 = arith.mulf %252, %264 : vector<16x64xf32>
    %c1_125 = arith.constant 1 : index
    %c0_126 = arith.constant 0 : index
    %c0_127 = arith.constant 0 : index
    %266 = vector.load %arg12[%c1_125, %c0_126, %c0_127] : memref<2x64x32xf32, #tpu.memory_space<vmem>>, vector<1x64x32xf32>
    %267 = vector.shape_cast %266 : vector<1x64x32xf32> to vector<64x32xf32>
    %cst_128 = arith.constant dense<0.000000e+00> : vector<16x32xf32>
    %268 = tpu.matmul %265, %267, %cst_128 {dimension_numbers = #tpu.dot_dimension_numbers<[1], [0], [0], [1], [0, 0, 1, 1], [], []>} : vector<16x64xf32>, vector<64x32xf32>, vector<16x32xf32> -> vector<16x32xf32>
    %c1_129 = arith.constant 1 : index
    %c0_130 = arith.constant 0 : index
    %c0_131 = arith.constant 0 : index
    %269 = vector.load %arg13[%c1_129, %c0_130, %c0_131] : memref<2x1x32xf32, #tpu.memory_space<vmem>>, vector<1x1x32xf32>
    %270 = vector.shape_cast %269 : vector<1x1x32xf32> to vector<1x32xf32>
    %271 = vector.broadcast %270 : vector<1x32xf32> to vector<16x32xf32>
    %272 = arith.addf %268, %271 : vector<16x32xf32>
    %273 = arith.addf %245, %272 : vector<16x32xf32>
    %c1_132 = arith.constant 1 : index
    %c0_133 = arith.constant 0 : index
    %c0_134 = arith.constant 0 : index
    %274 = vector.load %arg14[%c1_132, %c0_133, %c0_134] : memref<2x1x32xf32, #tpu.memory_space<vmem>>, vector<1x1x32xf32>
    %275 = vector.shape_cast %274 : vector<1x1x32xf32> to vector<1x32xf32>
    %c1_135 = arith.constant 1 : index
    %c0_136 = arith.constant 0 : index
    %c0_137 = arith.constant 0 : index
    %276 = vector.load %arg15[%c1_135, %c0_136, %c0_137] : memref<2x1x32xf32, #tpu.memory_space<vmem>>, vector<1x1x32xf32>
    %277 = vector.shape_cast %276 : vector<1x1x32xf32> to vector<1x32xf32>
    %cst_138 = arith.constant dense<0.000000e+00> : vector<16xf32>
    %278 = vector.multi_reduction <add>, %273, %cst_138 [1] : vector<16x32xf32> to vector<16xf32>
    %279 = vector.shape_cast %278 : vector<16xf32> to vector<16x1xf32>
    %cst_139 = arith.constant 3.200000e+01 : f32
    %280 = vector.broadcast %cst_139 : f32 to vector<16x1xf32>
    %281 = arith.divf %279, %280 : vector<16x1xf32>
    %282 = vector.broadcast %281 : vector<16x1xf32> to vector<16x32xf32>
    %283 = arith.subf %273, %282 : vector<16x32xf32>
    %284 = arith.mulf %283, %283 : vector<16x32xf32>
    %cst_140 = arith.constant dense<0.000000e+00> : vector<16xf32>
    %285 = vector.multi_reduction <add>, %284, %cst_140 [1] : vector<16x32xf32> to vector<16xf32>
    %286 = vector.shape_cast %285 : vector<16xf32> to vector<16x1xf32>
    %cst_141 = arith.constant 3.200000e+01 : f32
    %287 = vector.broadcast %cst_141 : f32 to vector<16x1xf32>
    %288 = arith.divf %286, %287 : vector<16x1xf32>
    %cst_142 = arith.constant 9.99999996E-13 : f32
    %289 = vector.broadcast %cst_142 : f32 to vector<16x1xf32>
    %290 = arith.addf %288, %289 : vector<16x1xf32>
    %291 = math.rsqrt %290 : vector<16x1xf32>
    %292 = vector.broadcast %291 : vector<16x1xf32> to vector<16x32xf32>
    %293 = arith.mulf %283, %292 : vector<16x32xf32>
    %294 = vector.broadcast %275 : vector<1x32xf32> to vector<16x32xf32>
    %295 = arith.mulf %293, %294 : vector<16x32xf32>
    %296 = vector.broadcast %277 : vector<1x32xf32> to vector<16x32xf32>
    %297 = arith.addf %295, %296 : vector<16x32xf32>
    %298 = vector.extract_strided_slice %297 {offsets = [0, 0], sizes = [1, 32], strides = [1, 1]} : vector<16x32xf32> to vector<1x32xf32>
    %299 = vector.extract_strided_slice %297 {offsets = [8, 0], sizes = [1, 32], strides = [1, 1]} : vector<16x32xf32> to vector<1x32xf32>
    %300 = tpu.concatenate %298, %299 in 0 : vector<1x32xf32>, vector<1x32xf32> -> vector<2x32xf32>
    %c0_143 = arith.constant 0 : index
    %c0_144 = arith.constant 0 : index
    %301 = vector.load %arg16[%c0_143, %c0_144] : memref<2x32xf32, #tpu.memory_space<vmem>>, vector<2x32xf32>
    tpu.vector_store %arg16[%c0_143, %c0_144], %300 {strides = array<i32>} : memref<2x32xf32, #tpu.memory_space<vmem>>, vector<2x32xf32>,
    return
  }
}

</mosaic_0001>

<bundles_post_ra>
// kernel: text_encoder_forward.1
= control target key start
LH: loop header
LB: loop body
LE: loop exit
PB: predicated region body
PF: predicated region fallthrough
CT: control target
= control target key end

     0   :  { %s1954_s0 = inlined_call_operand.vmem [shape: f32[16,32], index: 0, kind: input, shape index: {}]   ;;  %s1955_s1 = inlined_call_operand.vmem [shape: f32[2,8,8], index: 1, kind: input, shape index: {}]   ;;  %s1956_s2 = inlined_call_operand.vmem [shape: f32[1,32], index: 2, kind: input, shape index: {}]   ;;  %s1957_s3 = inlined_call_operand.vmem [shape: f32[1,32], index: 3, kind: input, shape index: {}]   ;;  %s1958_s4 = inlined_call_operand.vmem [shape: f32[2,32,96], index: 4, kind: input, shape index: {}]   ;;  %s1959_s5 = inlined_call_operand.vmem [shape: f32[2,1,96], index: 5, kind: input, shape index: {}]   ;;  %s1960_s6 = inlined_call_operand.vmem [shape: f32[4,16,32], index: 6, kind: input, shape index: {}]   ;;  %s1961_s7 = inlined_call_operand.vmem [shape: f32[2,1,32], index: 7, kind: input, shape index: {}]   ;;  %s1962_s8 = inlined_call_operand.vmem [shape: f32[2,1,32], index: 8, kind: input, shape index: {}]   ;;  %s1963_s9 = inlined_call_operand.vmem [shape: f32[2,1,32], index: 9, kind: input, shape index: {}]   ;;  %s1964_s10 = inlined_call_operand.vmem [shape: f32[2,32,64], index: 10, kind: input, shape index: {}]   ;;  %s1965_s11 = inlined_call_operand.vmem [shape: f32[2,1,64], index: 11, kind: input, shape index: {}]   ;;  %s1966_s12 = inlined_call_operand.vmem [shape: f32[2,64,32], index: 12, kind: input, shape index: {}]   ;;  %s1967_s13 = inlined_call_operand.vmem [shape: f32[2,1,32], index: 13, kind: input, shape index: {}]   ;;  %s1968_s14 = inlined_call_operand.vmem [shape: f32[2,1,32], index: 14, kind: input, shape index: {}]   ;;  %s1969_s15 = inlined_call_operand.vmem [shape: f32[2,1,32], index: 15, kind: input, shape index: {}]   ;;  %s1970_s16 = inlined_call_operand.hbm [shape: f32[2,32], index: 16, kind: output, shape index: {}]  }
   0x1   :  { %1972 = sst [smem:[#allocation5_spill]] %s1954_s0 }
   0x2   :  { %s1973_s23 = sld [smem:[#allocation5_spill]]  ;;  %vm60_vm0 = vcmask 261120  }
   0x8   :  { %v56_v0 = vld [vmem:[%s1973_s23] sm:$0xff] }
   0x9   :  { %v61_v1 = vsel %vm60_vm0, %v56_v0, 0.0 }
   0xa   :  { %62 = vadd.xlane.f32.xlu0 %v61_v1 }
   0xb   :  { %21 = vsyncpa [#allocation3], 0  ;;  %v1509_v2 = vmov 32.0   ;;  %v57_v3 = vld [vmem:[%s1973_s23 + $0x8] sm:$0xff]  ;;  %v125_v16 = vld [vmem:[%s1958_s4 + $0x18] sm:$0xff]  ;;  %s1511_s24 = smov 96  }
   0xc   :  { %1421 = vrcp.f32 %v1509_v2  ;;  %v64_v4 = vsel %vm60_vm0, %v57_v3, 0.0  ;;  %148 = vmatpush.msra.mxu0 %v125_v16  ;;  %v124_v17 = vld [vmem:[%s1958_s4 + $0x10] sm:$0xff]  ;;  %v123_v18 = vld [vmem:[%s1958_s4 + $0x8] sm:$0xff]  ;;  %v122_v19 = vld [vmem:[%s1958_s4] sm:$0xff]  ;;  %s1512_s25 = smov 80   ;;  %vm162_vm8 = vcmask 130048  }
   0xd   :  { %65 = vadd.xlane.f32.xlu1 %v64_v4  ;;  %v1403_v34 = vld [vmem:[%s1956_s2] ss:$0 sm:$0xff]  ;;  %vm214_vm9 = vcmask 64512   ;;  %s1513_s28 = smov 112  }
   0xe   :  { %149 = vmatpush.msra.mxu0 %v124_v17  ;;  %v1404_v37 = vld [vmem:[%s1957_s3] ss:$0 sm:$0xff]  ;;  %s1510_s3 = smov 64  }
   0xf   :  { %v1405_v47 = vld [vmem:[%s1959_s5] ss:$0 sm:$0xff] }
  0x10   :  { %150 = vmatpush.msra.mxu0 %v123_v18  ;;  %v1665_v61 = vld [vmem:[%s1955_s1] sm:$0xff] }
  0x12   :  { %v1422_v5 = vpop.eup %1421  ;;  %151 = vmatpush.msra.mxu0 %v122_v19  ;;  %v289_v19 = vld [vmem:[%s1960_s6] sm:$0xff] }
  0x13   :  { %v68_v6 = vmul.f32 32.0, %v1422_v5  ;;  %vm72_vm1 = vweird.f32 %v1422_v5 }
  0x15   :  { %v69_v7 = vsub.f32 1.0, %v68_v6 }
  0x17   :  { %v70_v8 = vmul.f32 %v1422_v5, %v69_v7 }
  0x19   :  { %v71_v9 = vadd.f32 %v1422_v5, %v70_v8  ;;  %v290_v8 = vld [vmem:[%s1960_s6 + $0x8] sm:$0xff] }
  0x1a   :  { %473 = vmatpush.msrb.mxu0 %v290_v8 }
  0x1b   :  { %v1609_v10 = vsel %vm72_vm1, %v1422_v5, %v71_v9  ;;  %vm613_vm1 = vcmask 523264  }
  0x1c   :  { %474 = vmatpush.msrb.mxu0 %v289_v19 }
  0x7d   :  { %v63_v11 = vpop.xlane.xlu0 %62 }
  0x7e   :  { %v74_v12 = vmul.f32 %v1609_v10, %v63_v11 }
  0x80   :  { %v76_v13 = vsub.f32 %v56_v0, %v74_v12  ;;  %v66_v20 = vpop.xlane.xlu1 %65 }
  0x81   :  { %v75_v21 = vmul.f32 %v1609_v10, %v66_v20 }
  0x82   :  { %v78_v14 = vmul.f32 %v76_v13, %v76_v13 }
  0x83   :  { %v77_v23 = vsub.f32 %v57_v3, %v75_v21 }
  0x84   :  { %v80_v15 = vsel %vm60_vm0, %v78_v14, 0.0 }
  0x85   :  { %81 = vadd.xlane.f32.xlu0 %v80_v15  ;;  %v79_v25 = vmul.f32 %v77_v23, %v77_v23 }
  0x87   :  { %v83_v27 = vsel %vm60_vm0, %v79_v25, 0.0 }
  0x88   :  { %84 = vadd.xlane.f32.xlu2 %v83_v27 }
  0xf8   :  { %v82_v22 = vpop.xlane.xlu0 %81 }
  0xf9   :  { %v86_v24 = vmul.f32 %v82_v22, %v1609_v10 }
  0xfb   :  { %v88_v26 = vadd.f32 1e-12, %v86_v24  ;;  %v85_v40 = vpop.xlane.xlu2 %84 }
  0xfc   :  { %v87_v41 = vmul.f32 %v85_v40, %v1609_v10 }
  0xfd   :  { %1423 = vrsqrt.f32 %v88_v26  ;;  %vm96_vm3 = vweird.f32 %v88_v26 }
  0xfe   :  { %v89_v42 = vadd.f32 1e-12, %v87_v41 }
 0x100   :  { %1425 = vrsqrt.f32 %v89_v42  ;;  %vm106_vm5 = vweird.f32 %v89_v42 }
 0x103   :  { %v1424_v28 = vpop.eup %1423 }
 0x104   :  { %v91_v29 = vmul.f32 %v1424_v28, %v88_v26  ;;  %vm97_vm2 = vweird.f32 %v1424_v28 }
 0x105   :  { %vm98_vm4 = vmor %vm96_vm3, %vm97_vm2 }
 0x106   :  { %v92_v30 = vmul.f32 %v1424_v28, %v91_v29  ;;  %v1426_v43 = vpop.eup %1425 }
 0x107   :  { %v101_v44 = vmul.f32 %v1426_v43, %v89_v42  ;;  %vm107_vm6 = vweird.f32 %v1426_v43 }
 0x108   :  { %v93_v31 = vmul.f32 0.5, %v92_v30  ;;  %vm108_vm7 = vmor %vm106_vm5, %vm107_vm6 }
 0x109   :  { %v102_v45 = vmul.f32 %v1426_v43, %v101_v44 }
 0x10a   :  { %v94_v32 = vsub.f32 1.5, %v93_v31 }
 0x10b   :  { %v103_v46 = vmul.f32 0.5, %v102_v45 }
 0x10c   :  { %v95_v33 = vmul.f32 %v1424_v28, %v94_v32 }
 0x10d   :  { %v104_v48 = vsub.f32 1.5, %v103_v46 }
 0x10e   :  { %v99_v35 = vsel %vm98_vm4, %v1424_v28, %v95_v33 }
 0x10f   :  { %v110_v36 = vmul.f32 %v99_v35, %v76_v13  ;;  %v105_v49 = vmul.f32 %v1426_v43, %v104_v48  ;;  %v1687_v13 = vld [vmem:[%s1955_s1 + $0x8] sm:$0xff]  ;;  %s1514_s1 = smov 48  }
 0x111   :  { %v115_v38 = vmul.f32 %v1403_v34, %v110_v36  ;;  %v109_v52 = vsel %vm108_vm7, %v1426_v43, %v105_v49  ;;  %v1327_v49 = vld [vmem:[%s1960_s6 + $0x18] sm:$0xff] }
 0x112   :  { %v111_v53 = vmul.f32 %v109_v52, %v77_v23 }
 0x113   :  { %v1634_v39 = vadd.f32 %v1404_v37, %v115_v38 }
 0x114   :  { %v116_v54 = vmul.f32 %v1403_v34, %v111_v53 }
 0x115   :  { %1312 = vmatmul.msk.f32.vlgmr.msra.gmra.mxu0 %vm60_vm0, %v1634_v39 }
 0x116   :  { %v1648_v55 = vadd.f32 %v1404_v37, %v116_v54 }
 0x11d   :  { %1313 = vmatmul.msk.f32.gmra.mxu0 %vm60_vm0, %v1648_v55 }
 0x192   :  { %v153_v50 = vpop.f32.mrf.mxu0 }
 0x193   :  { %v1642_v51 = vadd.f32 %v1405_v47, %v153_v50 }
 0x195   :  { %237 = vrot.lane.b32.xlu0 %v1642_v51, %s1510_s3  ;;  %160 = vrot.lane.b32.xlu1 %v1642_v51, %s1511_s24 }
 0x19a   :  { %v156_v59 = vpop.f32.mrf.mxu0 }
 0x19b   :  { %v1658_v60 = vadd.f32 %v1405_v47, %v156_v59 }
 0x19d   :  { %293 = vrot.lane.b32.xlu1 %v1642_v51, %s1512_s25 }
 0x1a5   :  { %321 = vrot.lane.b32.xlu1 %v1658_v60, %s1512_s25 }
 0x207   :  { %v238_v56 = vpop.permute.xlu0 %237  ;;  %v161_v57 = vpop.permute.xlu1 %160 }
 0x208   :  { %1314 = vmatpush.xpose.msk.msra.mxu1 %vm162_vm8, %v161_v57 }
 0x20b   :  { %1315 = vmatmul.msk.f32.vlgmr.msra.gmra.mxu1 %vm162_vm8, %v1642_v51 }
 0x20c   :  { %258 = vmatpush.msrb.mxu1 %v238_v56 }
 0x20f   :  { %v294_v58 = vpop.permute.xlu1 %293 }
 0x210   :  { %1320 = vmatpush.xpose.msk.msra.mxu1 %vm162_vm8, %v294_v58  ;;  %v1326_v58 = vld [vmem:[%s1960_s6 + $0x10] sm:$0xff] }
 0x217   :  { %v322_v5 = vpop.permute.xlu1 %321 }
 0x288   :  { %v184_v62 = vpop.f32.mrf.mxu1 }
 0x289   :  { %v185_v63 = vadd.f32 %v184_v62, %v1665_v61 }
 0x28b   :  { %v215_v0 = vsel %vm214_vm9, %v185_v63, -inf }
 0x28c   :  { %216 = vmax.xlane.f32.xlu2 %v215_v0 }
 0x2a4   :  { %188 = vrot.lane.b32.xlu2 %v1658_v60, %s1511_s24 }
 0x2ac   :  { %291 = vrot.lane.b32.xlu2 %v1642_v51, %s1513_s28 }
 0x2ff   :  { %v217_v1 = vpop.xlane.xlu2 %216 }
 0x300   :  { %v221_v2 = vsub.f32 %v185_v63, %v217_v1  ;;  %v1406_v1 = vld [vmem:[%s1961_s7] ss:$0 sm:$0xff] }
 0x302   :  { %v223_v3 = vmul.f32 1.442695, %v221_v2 }
 0x304   :  { %1427 = vpow2.f32 %v223_v3 }
 0x307   :  { %v189_v4 = vpop.permute.xlu2 %188 }
 0x308   :  { %1316 = vmatpush.xpose.msk.msra.mxu2 %vm162_vm8, %v189_v4 }
 0x30a   :  { %v1428_v6 = vpop.eup %1427 }
 0x30b   :  { %1317 = vmatmul.msk.f32.vlgmr.msra.gmra.mxu2 %vm162_vm8, %v1658_v60  ;;  %v227_v7 = vsel %vm214_vm9, %v1428_v6, 0.0 }
 0x30c   :  { %1322 = vmatpush.xpose.msk.msrb.mxu2 %vm162_vm8, %v322_v5  ;;  %228 = vadd.xlane.f32.xlu0 %v227_v7 }
 0x30f   :  { %v292_v16 = vpop.permute.xlu2 %291 }
 0x310   :  { %444 = vmatpush.msra.mxu2 %v1327_v49 }
 0x312   :  { %445 = vmatpush.msra.mxu2 %v1326_v58  ;;  %v605_v58 = vld [vmem:[%s1966_s12 + $0x20] sm:$0xff] }
 0x320   :  { %319 = vrot.lane.b32.xlu0 %v1658_v60, %s1513_s28 }
 0x37f   :  { %v229_v9 = vpop.xlane.xlu0 %228 }
 0x380   :  { %1429 = vrcp.f32 %v229_v9 }
 0x386   :  { %v1430_v11 = vpop.eup %1429 }
 0x387   :  { %v235_v12 = vmul.f32 %v1430_v11, %v1428_v6 }
 0x389   :  { %1318 = vmatmul.msk.f32.vlgmr.msrb.gmra.mxu1 %vm214_vm9, %v235_v12 }
 0x38e   :  { %v211_v14 = vpop.f32.mrf.mxu2 }
 0x38f   :  { %v212_v15 = vadd.f32 %v211_v14, %v1687_v13 }
 0x391   :  { %1321 = vmatmul.msk.f32.vlgmr.msra.gmra.mxu1 %vm162_vm8, %v292_v16  ;;  %v218_v17 = vsel %vm214_vm9, %v212_v15, -inf }
 0x392   :  { %v320_v18 = vpop.permute.xlu0 %319  ;;  %219 = vmax.xlane.f32.xlu2 %v218_v17 }
 0x393   :  { %1323 = vmatmul.msk.f32.vlgmr.msrb.gmra.mxu2 %vm162_vm8, %v320_v18 }
 0x405   :  { %v220_v20 = vpop.xlane.xlu2 %219 }
 0x406   :  { %v222_v21 = vsub.f32 %v212_v15, %v220_v20  ;;  %v260_v22 = vpop.f32.mrf.mxu1 }
 0x407   :  { %1330 = vmatmul.msk.f32.vlgmr.msrb.gmra.mxu0 %vm162_vm8, %v260_v22  ;;  %v548_v22 = vld [vmem:[%s1964_s10 + $0x10] sm:$0xff] }
 0x408   :  { %v225_v23 = vmul.f32 1.442695, %v222_v21 }
 0x40a   :  { %1431 = vpow2.f32 %v225_v23  ;;  %v547_v23 = vld [vmem:[%s1964_s10 + $0x8] sm:$0xff] }
 0x40e   :  { %v316_v24 = vpop.f32.mrf.mxu1 }
 0x40f   :  { %v317_v25 = vadd.f32 %v316_v24, %v1665_v61  ;;  %v546_v24 = vld [vmem:[%s1964_s10] sm:$0xff] }
 0x410   :  { %v1432_v26 = vpop.eup %1431 }
 0x411   :  { %v347_v27 = vsel %vm214_vm9, %v317_v25, -inf  ;;  %v230_v28 = vsel %vm214_vm9, %v1432_v26, 0.0 }
 0x412   :  { %348 = vmax.xlane.f32.xlu1 %v347_v27  ;;  %231 = vadd.xlane.f32.xlu2 %v230_v28 }
 0x416   :  { %v344_v29 = vpop.f32.mrf.mxu2 }
 0x417   :  { %v345_v30 = vadd.f32 %v344_v29, %v1687_v13 }
 0x419   :  { %v350_v31 = vsel %vm214_vm9, %v345_v30, -inf }
 0x41a   :  { %351 = vmax.xlane.f32.xlu0 %v350_v31 }
 0x42a   :  { %369 = vrot.lane.b32.xlu2 %v1642_v51, %s1514_s1 }
 0x42e   :  { %263 = vrot.lane.b32.xlu0 %v1658_v60, %s1510_s3 }
 0x484   :  { %v476_v62 = vpop.f32.mrf.mxu0 }
 0x485   :  { %v349_v32 = vpop.xlane.xlu1 %348  ;;  %v232_v38 = vpop.xlane.xlu2 %231 }
 0x486   :  { %v353_v35 = vsub.f32 %v317_v25, %v349_v32 }
 0x488   :  { %v355_v37 = vmul.f32 1.442695, %v353_v35 }
 0x48d   :  { %v352_v33 = vpop.xlane.xlu0 %351  ;;  %v370_v47 = vpop.permute.xlu2 %369 }
 0x48e   :  { %v354_v34 = vsub.f32 %v345_v30, %v352_v33 }
 0x490   :  { %v357_v36 = vmul.f32 1.442695, %v354_v34 }
 0x492   :  { %1433 = vpow2.f32 %v357_v36 }
 0x493   :  { %1435 = vrcp.f32 %v232_v38  ;;  %v1407_v38 = vld [vmem:[%s1962_s8] ss:$0 sm:$0xff] }
 0x494   :  { %1437 = vpow2.f32 %v355_v37 }
 0x498   :  { %v1434_v40 = vpop.eup %1433 }
 0x499   :  { %v362_v41 = vsel %vm214_vm9, %v1434_v40, 0.0  ;;  %v1436_v42 = vpop.eup %1435 }
 0x49a   :  { %363 = vadd.xlane.f32.xlu1 %v362_v41  ;;  %v1438_v43 = vpop.eup %1437  ;;  %v236_v45 = vmul.f32 %v1436_v42, %v1432_v26 }
 0x49b   :  { %v359_v46 = vsel %vm214_vm9, %v1438_v43, 0.0 }
 0x4a0   :  { %v264_v44 = vpop.permute.xlu0 %263 }
 0x4a1   :  { %284 = vmatpush.msra.mxu3 %v264_v44 }
 0x4a2   :  { %360 = vadd.xlane.f32.xlu1 %v359_v46  ;;  %1319 = vmatmul.msk.f32.vlgmr.msra.gmra.mxu3 %vm214_vm9, %v236_v45 }
 0x4a3   :  { %390 = vmatpush.msrb.mxu3 %v370_v47 }
 0x4bb   :  { %395 = vrot.lane.b32.xlu1 %v1658_v60, %s1514_s1 }
 0x50d   :  { %v364_v48 = vpop.xlane.xlu1 %363 }
 0x515   :  { %v361_v50 = vpop.xlane.xlu1 %360 }
 0x516   :  { %1439 = vrcp.f32 %v361_v50 }
 0x517   :  { %1441 = vrcp.f32 %v364_v48 }
 0x51c   :  { %v1440_v51 = vpop.eup %1439 }
 0x51d   :  { %v367_v52 = vmul.f32 %v1440_v51, %v1438_v43  ;;  %v1442_v54 = vpop.eup %1441  ;;  %v1408_v43 = vld [vmem:[%s1963_s9] ss:$0 sm:$0xff] }
 0x51e   :  { %v368_v56 = vmul.f32 %v1442_v54, %v1434_v40  ;;  %v608_v54 = vld [vmem:[%s1966_s12 + $0x38] sm:$0xff] }
 0x51f   :  { %1324 = vmatmul.msk.f32.vlgmr.msrb.gmra.mxu3 %vm214_vm9, %v367_v52 }
 0x525   :  { %v286_v53 = vpop.f32.mrf.mxu3 }
 0x526   :  { %1331 = vmatmul.msk.f32.gmra.mxu0 %vm162_vm8, %v286_v53 }
 0x52d   :  { %v396_v57 = vpop.permute.xlu1 %395 }
 0x52e   :  { %416 = vmatpush.msrb.mxu1 %v396_v57  ;;  %v606_v57 = vld [vmem:[%s1966_s12 + $0x28] sm:$0xff] }
 0x52f   :  { %1325 = vmatmul.msk.f32.vlgmr.msrb.gmra.mxu1 %vm214_vm9, %v368_v56  ;;  %v607_v56 = vld [vmem:[%s1966_s12 + $0x30] sm:$0xff] }
 0x530   :  { %628 = vmatpush.msra.mxu1 %v608_v54 }
 0x532   :  { %629 = vmatpush.msra.mxu1 %v607_v56 }
 0x534   :  { %630 = vmatpush.msra.mxu1 %v606_v57 }
 0x536   :  { %631 = vmatpush.msra.mxu1 %v605_v58 }
 0x5a2   :  { %v392_v59 = vpop.f32.mrf.mxu3 }
 0x5a3   :  { %1328 = vmatmul.msk.f32.vlgmr.msra.gmra.mxu2 %vm162_vm8, %v392_v59  ;;  %v479_v5 = vpop.f32.mrf.mxu0  ;;  %v604_v59 = vld [vmem:[%s1966_s12 + $0x18] sm:$0xff] }
 0x5a4   :  { %632 = vmatpush.msra.mxu1 %v604_v59 }
 0x5ac   :  { %v418_v60 = vpop.f32.mrf.mxu1 }
 0x5ad   :  { %1329 = vmatmul.msk.f32.gmra.mxu2 %vm162_vm8, %v418_v60  ;;  %v603_v60 = vld [vmem:[%s1966_s12 + $0x10] sm:$0xff] }
 0x5ae   :  { %633 = vmatpush.msra.mxu1 %v603_v60 }
 0x626   :  { %v447_v63 = vpop.f32.mrf.mxu2 }
 0x627   :  { %v477_v0 = vadd.f32 %v476_v62, %v447_v63  ;;  %v602_v62 = vld [vmem:[%s1966_s12 + $0x8] sm:$0xff]  ;;  %v601_v63 = vld [vmem:[%s1966_s12] sm:$0xff] }
 0x628   :  { %634 = vmatpush.msra.mxu1 %v602_v62  ;;  %v1411_v62 = vld [vmem:[%s1968_s14] ss:$0 sm:$0xff] }
 0x629   :  { %v482_v2 = vadd.f32 %v477_v0, %v1634_v39  ;;  %v1409_v0 = vld [vmem:[%s1965_s11] ss:$0 sm:$0xff] }
 0x62a   :  { %635 = vmatpush.msra.mxu1 %v601_v63 }
 0x62b   :  { %v488_v3 = vadd.f32 %v1406_v1, %v482_v2 }
 0x62d   :  { %v492_v4 = vsel %vm60_vm0, %v488_v3, 0.0 }
 0x62e   :  { %493 = vadd.xlane.f32.xlu0 %v492_v4 }
 0x630   :  { %v450_v6 = vpop.f32.mrf.mxu2 }
 0x631   :  { %v480_v7 = vadd.f32 %v479_v5, %v450_v6 }
 0x633   :  { %v483_v8 = vadd.f32 %v480_v7, %v1648_v55  ;;  %v549_v55 = vld [vmem:[%s1964_s10 + $0x18] sm:$0xff] }
 0x634   :  { %572 = vmatpush.msra.mxu3 %v549_v55 }
 0x635   :  { %v489_v9 = vadd.f32 %v1406_v1, %v483_v8 }
 0x636   :  { %573 = vmatpush.msra.mxu3 %v548_v22 }
 0x637   :  { %v495_v11 = vsel %vm60_vm0, %v489_v9, 0.0 }
 0x638   :  { %496 = vadd.xlane.f32.xlu2 %v495_v11  ;;  %574 = vmatpush.msra.mxu3 %v547_v23  ;;  %v1410_v23 = vld [vmem:[%s1967_s13] ss:$0 sm:$0xff] }
 0x63a   :  { %575 = vmatpush.msra.mxu3 %v546_v24 }
 0x6a1   :  { %v494_v12 = vpop.xlane.xlu0 %493 }
 0x6a2   :  { %v498_v14 = vmul.f32 %v494_v12, %v1609_v10 }
 0x6a4   :  { %v500_v15 = vsub.f32 %v488_v3, %v498_v14 }
 0x6a6   :  { %v502_v16 = vmul.f32 %v500_v15, %v500_v15 }
 0x6a8   :  { %v504_v39 = vsel %vm60_vm0, %v502_v16, 0.0 }
 0x6a9   :  { %505 = vadd.xlane.f32.xlu1 %v504_v39 }
 0x6ab   :  { %v497_v17 = vpop.xlane.xlu2 %496 }
 0x6ac   :  { %v499_v18 = vmul.f32 %v497_v17, %v1609_v10 }
 0x6ae   :  { %v501_v19 = vsub.f32 %v489_v9, %v499_v18 }
 0x6b0   :  { %v503_v20 = vmul.f32 %v501_v19, %v501_v19 }
 0x6b2   :  { %v507_v21 = vsel %vm60_vm0, %v503_v20, 0.0 }
 0x6b3   :  { %508 = vadd.xlane.f32.xlu0 %v507_v21 }
 0x71c   :  { %v506_v25 = vpop.xlane.xlu1 %505 }
 0x71d   :  { %v510_v26 = vmul.f32 %v506_v25, %v1609_v10 }
 0x71f   :  { %v512_v27 = vadd.f32 1e-12, %v510_v26 }
 0x721   :  { %1443 = vrsqrt.f32 %v512_v27  ;;  %vm520_vm11 = vweird.f32 %v512_v27 }
 0x726   :  { %v509_v28 = vpop.xlane.xlu0 %508 }
 0x727   :  { %v1444_v29 = vpop.eup %1443  ;;  %v511_v30 = vmul.f32 %v509_v28, %v1609_v10 }
 0x728   :  { %v515_v31 = vmul.f32 %v1444_v29, %v512_v27  ;;  %vm521_vm10 = vweird.f32 %v1444_v29 }
 0x729   :  { %v513_v32 = vadd.f32 1e-12, %v511_v30  ;;  %vm522_vm12 = vmor %vm520_vm11, %vm521_vm10 }
 0x72a   :  { %v516_v33 = vmul.f32 %v1444_v29, %v515_v31 }
 0x72b   :  { %1445 = vrsqrt.f32 %v513_v32  ;;  %vm530_vm14 = vweird.f32 %v513_v32 }
 0x72c   :  { %v517_v34 = vmul.f32 0.5, %v516_v33 }
 0x72e   :  { %v518_v35 = vsub.f32 1.5, %v517_v34 }
 0x730   :  { %v519_v36 = vmul.f32 %v1444_v29, %v518_v35 }
 0x731   :  { %v1446_v37 = vpop.eup %1445 }
 0x732   :  { %v523_v40 = vsel %vm522_vm12, %v1444_v29, %v519_v36  ;;  %v525_v41 = vmul.f32 %v1446_v37, %v513_v32  ;;  %vm531_vm13 = vweird.f32 %v1446_v37 }
 0x733   :  { %v534_v42 = vmul.f32 %v523_v40, %v500_v15  ;;  %vm532_vm15 = vmor %vm530_vm14, %vm531_vm13 }
 0x734   :  { %v526_v44 = vmul.f32 %v1446_v37, %v525_v41 }
 0x735   :  { %v539_v45 = vmul.f32 %v1407_v38, %v534_v42 }
 0x736   :  { %v527_v46 = vmul.f32 0.5, %v526_v44  ;;  %v1338_v44 = vld [vmem:[%s1958_s4 + $0x30] sm:$0xff] }
 0x737   :  { %v544_v47 = vadd.f32 %v1408_v43, %v539_v45  ;;  %v1337_v45 = vld [vmem:[%s1958_s4 + $0x28] sm:$0xff] }
 0x738   :  { %v528_v48 = vsub.f32 1.5, %v527_v46  ;;  %v1336_v46 = vld [vmem:[%s1958_s4 + $0x20] sm:$0xff] }
 0x739   :  { %1332 = vmatmul.msk.f32.vlgmr.msra.gmra.mxu3 %vm60_vm0, %v544_v47 }
 0x73a   :  { %v529_v49 = vmul.f32 %v1446_v37, %v528_v48 }
 0x73c   :  { %v533_v50 = vsel %vm532_vm15, %v1446_v37, %v529_v49 }
 0x73d   :  { %v535_v51 = vmul.f32 %v533_v50, %v501_v19 }
 0x73f   :  { %v540_v52 = vmul.f32 %v1407_v38, %v535_v51 }
 0x741   :  { %v545_v53 = vadd.f32 %v1408_v43, %v540_v52  ;;  %v1339_v43 = vld [vmem:[%s1958_s4 + $0x38] sm:$0xff] }
 0x742   :  { %729 = vmatpush.msrb.mxu2 %v1339_v43 }
 0x743   :  { %1333 = vmatmul.msk.f32.gmra.mxu3 %vm60_vm0, %v545_v53 }
 0x744   :  { %730 = vmatpush.msrb.mxu2 %v1338_v44 }
 0x746   :  { %731 = vmatpush.msrb.mxu2 %v1337_v45 }
 0x748   :  { %732 = vmatpush.msrb.mxu2 %v1336_v46 }
 0x7bc   :  { %v577_v1 = vpop.f32.mrf.mxu3 }
 0x7bd   :  { %v578_v2 = vadd.f32 %v1409_v0, %v577_v1 }
 0x7bf   :  { %v583_v3 = vmul.f32 %v578_v2, %v578_v2 }
 0x7c1   :  { %v585_v4 = vmul.f32 %v583_v3, %v578_v2 }
 0x7c3   :  { %v587_v5 = vmul.f32 0.044715, %v585_v4 }
 0x7c5   :  { %v589_v6 = vadd.f32 %v587_v5, %v578_v2 }
 0x7c6   :  { %v580_v7 = vpop.f32.mrf.mxu3 }
 0x7c7   :  { %v591_v8 = vmul.f32 0.7978846, %v589_v6  ;;  %v581_v9 = vadd.f32 %v1409_v0, %v580_v7 }
 0x7c9   :  { %1447 = vtanh.f32 %v591_v8  ;;  %v584_v11 = vmul.f32 %v581_v9, %v581_v9 }
 0x7cb   :  { %v586_v12 = vmul.f32 %v584_v11, %v581_v9 }
 0x7cd   :  { %v588_v14 = vmul.f32 0.044715, %v586_v12 }
 0x7cf   :  { %v1448_v15 = vpop.eup %1447  ;;  %v590_v16 = vadd.f32 %v588_v14, %v581_v9 }
 0x7d0   :  { %v595_v39 = vadd.f32 1.0, %v1448_v15  ;;  %v1413_v15 = vld [vmem:[%s1959_s5 + $0x1] ss:$0 sm:$0xff] }
 0x7d1   :  { %v592_v17 = vmul.f32 0.7978846, %v590_v16 }
 0x7d2   :  { %v597_v18 = vmul.f32 0.5, %v595_v39 }
 0x7d3   :  { %1449 = vtanh.f32 %v592_v17 }
 0x7d4   :  { %v599_v19 = vmul.f32 %v597_v18, %v578_v2  ;;  %v1412_v2 = vld [vmem:[%s1969_s15] ss:$0 sm:$0xff] }
 0x7d6   :  { %1334 = vmatmul.msk.f32.vlgmr.msra.gmra.mxu1 %vm613_vm1, %v599_v19 }
 0x7d9   :  { %v1450_v20 = vpop.eup %1449 }
 0x7da   :  { %v596_v21 = vadd.f32 1.0, %v1450_v20 }
 0x7dc   :  { %v598_v55 = vmul.f32 0.5, %v596_v21 }
 0x7de   :  { %v600_v22 = vmul.f32 %v598_v55, %v581_v9 }
 0x7e0   :  { %1335 = vmatmul.msk.f32.gmra.mxu1 %vm613_vm1, %v600_v22 }
 0x853   :  { %v637_v24 = vpop.f32.mrf.mxu1 }
 0x854   :  { %v638_v25 = vadd.f32 %v1410_v23, %v637_v24 }
 0x856   :  { %v643_v26 = vadd.f32 %v638_v25, %v544_v47 }
 0x858   :  { %v647_v27 = vsel %vm60_vm0, %v643_v26, 0.0 }
 0x859   :  { %648 = vadd.xlane.f32.xlu2 %v647_v27 }
 0x85d   :  { %v640_v28 = vpop.f32.mrf.mxu1 }
 0x85e   :  { %v641_v29 = vadd.f32 %v1410_v23, %v640_v28 }
 0x860   :  { %v644_v30 = vadd.f32 %v641_v29, %v545_v53 }
 0x862   :  { %v650_v31 = vsel %vm60_vm0, %v644_v30, 0.0 }
 0x863   :  { %651 = vadd.xlane.f32.xlu0 %v650_v31 }
 0x8cc   :  { %v649_v32 = vpop.xlane.xlu2 %648 }
 0x8cd   :  { %v653_v33 = vmul.f32 %v649_v32, %v1609_v10 }
 0x8cf   :  { %v655_v34 = vsub.f32 %v643_v26, %v653_v33 }
 0x8d1   :  { %v657_v35 = vmul.f32 %v655_v34, %v655_v34 }
 0x8d3   :  { %v659_v36 = vsel %vm60_vm0, %v657_v35, 0.0 }
 0x8d4   :  { %660 = vadd.xlane.f32.xlu2 %v659_v36 }
 0x8d6   :  { %v652_v37 = vpop.xlane.xlu0 %651 }
 0x8d7   :  { %v654_v38 = vmul.f32 %v652_v37, %v1609_v10 }
 0x8d9   :  { %v656_v40 = vsub.f32 %v644_v30, %v654_v38 }
 0x8db   :  { %v658_v41 = vmul.f32 %v656_v40, %v656_v40 }
 0x8dd   :  { %v662_v42 = vsel %vm60_vm0, %v658_v41, 0.0 }
 0x8de   :  { %663 = vadd.xlane.f32.xlu0 %v662_v42 }
 0x947   :  { %v661_v47 = vpop.xlane.xlu2 %660 }
 0x948   :  { %v665_v48 = vmul.f32 %v661_v47, %v1609_v10 }
 0x94a   :  { %v667_v49 = vadd.f32 1e-12, %v665_v48 }
 0x94c   :  { %1451 = vrsqrt.f32 %v667_v49  ;;  %vm675_vm3 = vweird.f32 %v667_v49 }
 0x951   :  { %v664_v50 = vpop.xlane.xlu0 %663 }
 0x952   :  { %v1452_v51 = vpop.eup %1451  ;;  %v666_v52 = vmul.f32 %v664_v50, %v1609_v10 }
 0x953   :  { %v670_v53 = vmul.f32 %v1452_v51, %v667_v49  ;;  %vm676_vm2 = vweird.f32 %v1452_v51 }
 0x954   :  { %v668_v54 = vadd.f32 1e-12, %v666_v52  ;;  %vm677_vm4 = vmor %vm675_vm3, %vm676_vm2 }
 0x955   :  { %v671_v56 = vmul.f32 %v1452_v51, %v670_v53 }
 0x956   :  { %1453 = vrsqrt.f32 %v668_v54  ;;  %vm685_vm6 = vweird.f32 %v668_v54 }
 0x957   :  { %v672_v57 = vmul.f32 0.5, %v671_v56 }
 0x959   :  { %v673_v58 = vsub.f32 1.5, %v672_v57 }
 0x95b   :  { %v674_v59 = vmul.f32 %v1452_v51, %v673_v58 }
 0x95c   :  { %v1454_v60 = vpop.eup %1453 }
 0x95d   :  { %v678_v63 = vsel %vm677_vm4, %v1452_v51, %v674_v59  ;;  %v680_v0 = vmul.f32 %v1454_v60, %v668_v54  ;;  %vm686_vm5 = vweird.f32 %v1454_v60  ;;  %vm1292_vm4 = vcmask 1040384  }
 0x95e   :  { %v689_v1 = vmul.f32 %v678_v63, %v655_v34  ;;  %vm687_vm7 = vmor %vm685_vm6, %vm686_vm5  ;;  %vm1294_vm5 = vcmask 254976  }
 0x95f   :  { %v681_v3 = vmul.f32 %v1454_v60, %v680_v0  ;;  %v1350_v0 = vld [vmem:[%s1960_s6 + $0x28] sm:$0xff] }
 0x960   :  { %v694_v4 = vmul.f32 %v1411_v62, %v689_v1 }
 0x961   :  { %v682_v5 = vmul.f32 0.5, %v681_v3 }
 0x962   :  { %v1813_v6 = vadd.f32 %v1412_v2, %v694_v4 }
 0x963   :  { %v683_v7 = vsub.f32 1.5, %v682_v5 }
 0x964   :  { %1341 = vmatmul.msk.f32.vlgmr.msrb.gmra.mxu2 %vm60_vm0, %v1813_v6 }
 0x965   :  { %v684_v8 = vmul.f32 %v1454_v60, %v683_v7 }
 0x967   :  { %v688_v9 = vsel %vm687_vm7, %v1454_v60, %v684_v8 }
 0x968   :  { %v690_v11 = vmul.f32 %v688_v9, %v656_v40 }
 0x96a   :  { %v695_v12 = vmul.f32 %v1411_v62, %v690_v11 }
 0x96c   :  { %v1817_v14 = vadd.f32 %v1412_v2, %v695_v12 }
 0x96e   :  { %1342 = vmatmul.msk.f32.gmra.mxu2 %vm60_vm0, %v1817_v14 }
 0x9e7   :  { %v734_v16 = vpop.f32.mrf.mxu2 }
 0x9e8   :  { %v735_v39 = vadd.f32 %v1413_v15, %v734_v16 }
 0x9ea   :  { %741 = vrot.lane.b32.xlu2 %v735_v39, %s1511_s24 }
 0x9f1   :  { %v737_v17 = vpop.f32.mrf.mxu2 }
 0x9f2   :  { %v738_v18 = vadd.f32 %v1413_v15, %v737_v17  ;;  %871 = vrot.lane.b32.xlu2 %v735_v39, %s1513_s28 }
 0x9f4   :  { %901 = vrot.lane.b32.xlu0 %v738_v18, %s1512_s25  ;;  %768 = vrot.lane.b32.xlu1 %v738_v18, %s1511_s24 }
 0x9fc   :  { %899 = vrot.lane.b32.xlu1 %v738_v18, %s1513_s28  ;;  %873 = vrot.lane.b32.xlu0 %v735_v39, %s1512_s25 }
 0xa44   :  { %v742_v19 = vpop.permute.xlu2 %741 }
 0xa45   :  { %1343 = vmatpush.xpose.msk.msra.mxu0 %vm162_vm8, %v742_v19  ;;  %v1357_v19 = vld [vmem:[%s1960_s6 + $0x30] sm:$0xff] }
 0xa48   :  { %1344 = vmatmul.msk.f32.vlgmr.msra.gmra.mxu0 %vm162_vm8, %v735_v39 }
 0xa4c   :  { %v872_v23 = vpop.permute.xlu2 %871 }
 0xa66   :  { %v902_v20 = vpop.permute.xlu0 %901  ;;  %v769_v21 = vpop.permute.xlu1 %768 }
 0xa67   :  { %1345 = vmatpush.xpose.msk.msrb.mxu3 %vm162_vm8, %v769_v21  ;;  %1353 = vmatpush.xpose.msk.msra.mxu2 %vm162_vm8, %v902_v20 }
 0xa6a   :  { %1346 = vmatmul.msk.f32.vlgmr.msrb.gmra.mxu3 %vm162_vm8, %v738_v18 }
 0xa6b   :  { %1053 = vmatpush.msrb.mxu2 %v1350_v0 }
 0xa6e   :  { %v900_v55 = vpop.permute.xlu1 %899  ;;  %v874_v22 = vpop.permute.xlu0 %873 }
 0xa6f   :  { %1351 = vmatpush.xpose.msk.msrb.mxu1 %vm162_vm8, %v874_v22  ;;  %1354 = vmatmul.msk.f32.vlgmr.msra.gmra.mxu2 %vm162_vm8, %v900_v55 }
 0xa72   :  { %1352 = vmatmul.msk.f32.vlgmr.msrb.gmra.mxu1 %vm162_vm8, %v872_v23 }
 0xac5   :  { %v764_v24 = vpop.f32.mrf.mxu0 }
 0xac6   :  { %v765_v25 = vadd.f32 %v764_v24, %v1665_v61 }
 0xac8   :  { %v794_v26 = vsel %vm214_vm9, %v765_v25, -inf }
 0xac9   :  { %795 = vmax.xlane.f32.xlu1 %v794_v26 }
 0xaed   :  { %v791_v27 = vpop.f32.mrf.mxu3 }
 0xaee   :  { %v792_v28 = vadd.f32 %v791_v27, %v1687_v13 }
 0xaef   :  { %v896_v29 = vpop.f32.mrf.mxu1 }
 0xaf0   :  { %v897_v30 = vadd.f32 %v896_v29, %v1665_v61  ;;  %v797_v31 = vsel %vm214_vm9, %v792_v28, -inf  ;;  %v1393_v61 = vpack.i.bf16 %v738_v18, %v735_v39  ;;  %v1349_v39 = vld [vmem:[%s1960_s6 + $0x20] sm:$0xff]  ;;  %v1358_v18 = vld [vmem:[%s1960_s6 + $0x38] sm:$0xff] }
 0xaf1   :  { %798 = vmax.xlane.f32.xlu0 %v797_v31  ;;  %1054 = vmatpush.msrb.mxu2 %v1349_v39  ;;  %v1379_v39 = vld [vmem:[%s1966_s12 + $0x70] sm:$0xff] }
 0xaf2   :  { %v924_v32 = vpop.f32.mrf.mxu2  ;;  %v927_v33 = vsel %vm214_vm9, %v897_v30, -inf  ;;  %1024 = vmatpush.msra.mxu1 %v1358_v18  ;;  %v1377_v18 = vld [vmem:[%s1966_s12 + $0x60] sm:$0xff] }
 0xaf3   :  { %v925_v34 = vadd.f32 %v924_v32, %v1687_v13  ;;  %928 = vmax.xlane.f32.xlu2 %v927_v33 }
 0xaf4   :  { %1025 = vmatpush.msra.mxu1 %v1357_v19  ;;  %v1376_v19 = vld [vmem:[%s1966_s12 + $0x58] sm:$0xff] }
 0xaf5   :  { %v930_v35 = vsel %vm214_vm9, %v925_v34, -inf }
 0xaf6   :  { %931 = vmax.xlane.f32.xlu1 %v930_v35 }
 0xb3c   :  { %v796_v36 = vpop.xlane.xlu1 %795 }
 0xb3d   :  { %v800_v37 = vsub.f32 %v765_v25, %v796_v36  ;;  %v1414_v25 = vld [vmem:[%s1961_s7 + $0x1] ss:$0 sm:$0xff] }
 0xb3f   :  { %v802_v38 = vmul.f32 1.442695, %v800_v37 }
 0xb41   :  { %1455 = vpow2.f32 %v802_v38 }
 0xb47   :  { %v1456_v40 = vpop.eup %1455 }
 0xb48   :  { %v806_v41 = vsel %vm214_vm9, %v1456_v40, 0.0 }
 0xb49   :  { %807 = vadd.xlane.f32.xlu0 %v806_v41 }
 0xb5d   :  { %1394 = vrot.lane.b32.xlu0 %v1393_v61, %s1510_s3 }
 0xb64   :  { %v799_v42 = vpop.xlane.xlu0 %798 }
 0xb65   :  { %v801_v43 = vsub.f32 %v792_v28, %v799_v42 }
 0xb66   :  { %v929_v44 = vpop.xlane.xlu2 %928 }
 0xb67   :  { %v804_v45 = vmul.f32 1.442695, %v801_v43  ;;  %v933_v13 = vsub.f32 %v897_v30, %v929_v44  ;;  %v1368_v44 = vld [vmem:[%s1964_s10 + $0x30] sm:$0xff] }
 0xb69   :  { %1457 = vpow2.f32 %v804_v45  ;;  %v935_v46 = vmul.f32 1.442695, %v933_v13  ;;  %v932_v47 = vpop.xlane.xlu1 %931  ;;  %v1367_v45 = vld [vmem:[%s1964_s10 + $0x28] sm:$0xff]  ;;  %v1366_v13 = vld [vmem:[%s1964_s10 + $0x20] sm:$0xff] }
 0xb6a   :  { %v934_v48 = vsub.f32 %v925_v34, %v932_v47 }
 0xb6b   :  { %1459 = vpow2.f32 %v935_v46 }
 0xb6c   :  { %v937_v49 = vmul.f32 1.442695, %v934_v48 }
 0xb6e   :  { %1461 = vpow2.f32 %v937_v49 }
 0xb6f   :  { %v1458_v50 = vpop.eup %1457 }
 0xb70   :  { %v809_v51 = vsel %vm214_vm9, %v1458_v50, 0.0 }
 0xb71   :  { %v1460_v52 = vpop.eup %1459  ;;  %810 = vadd.xlane.f32.xlu2 %v809_v51 }
 0xb72   :  { %v939_v53 = vsel %vm214_vm9, %v1460_v52, 0.0 }
 0xb73   :  { %940 = vadd.xlane.f32.xlu1 %v939_v53 }
 0xb74   :  { %v1462_v54 = vpop.eup %1461 }
 0xb75   :  { %v942_v56 = vsel %vm214_vm9, %v1462_v54, 0.0 }
 0xb79   :  { %943 = vadd.xlane.f32.xlu2 %v942_v56 }
 0xb8c   :  { %1399 = vrot.lane.b32.xlu1 %v1393_v61, %s1514_s1 }
 0xbbc   :  { %v808_v57 = vpop.xlane.xlu0 %807 }
 0xbbd   :  { %1463 = vrcp.f32 %v808_v57 }
 0xbc3   :  { %v1464_v58 = vpop.eup %1463 }
 0xbc4   :  { %v814_v63 = vmul.f32 %v1464_v58, %v1456_v40 }
 0xbcf   :  { %v1395_v59 = vpop.permute.xlu0 %1394 }
 0xbd0   :  { %v1397_v60 = vunpack.i.h.bf16 %v1395_v59  ;;  %v1396_v62 = vunpack.i.l.bf16 %v1395_v59 }
 0xbd2   :  { %837 = vmatpush.msrb.mxu0 %v1396_v62  ;;  %863 = vmatpush.msra.mxu3 %v1397_v60  ;;  %v1415_v62 = vld [vmem:[%s1962_s8 + $0x1] ss:$0 sm:$0xff] }
 0xbd3   :  { %1347 = vmatmul.msk.f32.vlgmr.msrb.gmra.mxu0 %vm214_vm9, %v814_v63 }
 0xbe4   :  { %v811_v1 = vpop.xlane.xlu2 %810 }
 0xbe5   :  { %1465 = vrcp.f32 %v811_v1 }
 0xbe6   :  { %v941_v4 = vpop.xlane.xlu1 %940 }
 0xbe7   :  { %1467 = vrcp.f32 %v941_v4 }
 0xbeb   :  { %v1466_v2 = vpop.eup %1465 }
 0xbec   :  { %v815_v3 = vmul.f32 %v1466_v2, %v1458_v50  ;;  %v944_v5 = vpop.xlane.xlu2 %943  ;;  %v1416_v2 = vld [vmem:[%s1963_s9 + $0x1] ss:$0 sm:$0xff] }
 0xbed   :  { %1469 = vrcp.f32 %v944_v5  ;;  %v1468_v7 = vpop.eup %1467 }
 0xbee   :  { %1348 = vmatmul.msk.f32.vlgmr.msra.gmra.mxu3 %vm214_vm9, %v815_v3  ;;  %v947_v15 = vmul.f32 %v1468_v7, %v1460_v52 }
 0xbf3   :  { %v1470_v8 = vpop.eup %1469 }
 0xbf4   :  { %v948_v16 = vmul.f32 %v1470_v8, %v1462_v54 }
 0xbfe   :  { %v1400_v9 = vpop.permute.xlu1 %1399 }
 0xbff   :  { %v1402_v11 = vunpack.i.h.bf16 %v1400_v9  ;;  %v1401_v12 = vunpack.i.l.bf16 %v1400_v9 }
 0xc01   :  { %970 = vmatpush.msra.mxu0 %v1401_v12  ;;  %996 = vmatpush.msrb.mxu3 %v1402_v11 }
 0xc02   :  { %1355 = vmatmul.msk.f32.vlgmr.msra.gmra.mxu0 %vm214_vm9, %v947_v15  ;;  %1356 = vmatmul.msk.f32.vlgmr.msrb.gmra.mxu3 %vm214_vm9, %v948_v16  ;;  %v1380_v16 = vld [vmem:[%s1966_s12 + $0x78] sm:$0xff] }
 0xc03   :  { %1214 = vmatpush.msra.mxu3 %v1380_v16 }
 0xc05   :  { %1215 = vmatpush.msra.mxu3 %v1379_v39 }
 0xc50   :  { %v839_v17 = vpop.f32.mrf.mxu0 }
 0xc51   :  { %1361 = vmatmul.msk.f32.vlgmr.msrb.gmra.mxu2 %vm162_vm8, %v839_v17  ;;  %v1378_v17 = vld [vmem:[%s1966_s12 + $0x68] sm:$0xff] }
 0xc52   :  { %1216 = vmatpush.msra.mxu3 %v1378_v17 }
 0xc54   :  { %1217 = vmatpush.msra.mxu3 %v1377_v18 }
 0xc56   :  { %1218 = vmatpush.msra.mxu3 %v1376_v19 }
 0xc71   :  { %v865_v20 = vpop.f32.mrf.mxu3 }
 0xc72   :  { %1362 = vmatmul.msk.f32.gmra.mxu2 %vm162_vm8, %v865_v20  ;;  %v1375_v20 = vld [vmem:[%s1966_s12 + $0x50] sm:$0xff] }
 0xc73   :  { %1219 = vmatpush.msra.mxu3 %v1375_v20 }
 0xc7f   :  { %v972_v21 = vpop.f32.mrf.mxu0 }
 0xc80   :  { %1359 = vmatmul.msk.f32.vlgmr.msra.gmra.mxu1 %vm162_vm8, %v972_v21  ;;  %v1374_v21 = vld [vmem:[%s1966_s12 + $0x48] sm:$0xff] }
 0xc81   :  { %1220 = vmatpush.msra.mxu3 %v1374_v21 }
 0xc85   :  { %v998_v55 = vpop.f32.mrf.mxu3 }
 0xc88   :  { %1360 = vmatmul.msk.f32.gmra.mxu1 %vm162_vm8, %v998_v55  ;;  %v1373_v55 = vld [vmem:[%s1966_s12 + $0x40] sm:$0xff] }
 0xc89   :  { %1221 = vmatpush.msra.mxu3 %v1373_v55  ;;  %v1420_v55 = vld [vmem:[%s1969_s15 + $0x1] ss:$0 sm:$0xff] }
 0xcd4   :  { %v1056_v22 = vpop.f32.mrf.mxu2 }
 0xcf5   :  { %v1059_v29 = vpop.f32.mrf.mxu2 }
 0xcfd   :  { %v1027_v23 = vpop.f32.mrf.mxu1 }
 0xcfe   :  { %v1057_v24 = vadd.f32 %v1056_v22, %v1027_v23  ;;  %v1417_v22 = vld [vmem:[%s1965_s11 + $0x1] ss:$0 sm:$0xff] }
 0xd00   :  { %v1062_v26 = vadd.f32 %v1057_v24, %v1813_v6 }
 0xd02   :  { %v1069_v27 = vadd.f32 %v1414_v25, %v1062_v26 }
 0xd04   :  { %v1075_v28 = vsel %vm60_vm0, %v1069_v27, 0.0 }
 0xd05   :  { %1076 = vadd.xlane.f32.xlu2 %v1075_v28  ;;  %v1030_v30 = vpop.f32.mrf.mxu1 }
 0xd06   :  { %v1060_v31 = vadd.f32 %v1059_v29, %v1030_v30 }
 0xd08   :  { %v1063_v32 = vadd.f32 %v1060_v31, %v1817_v14  ;;  %v1369_v14 = vld [vmem:[%s1964_s10 + $0x38] sm:$0xff]  ;;  %s1515_s10 = smov [#allocation2]  }
 0xd09   :  { %1157 = vmatpush.msrb.mxu0 %v1369_v14  ;;  %v1418_v14 = vld [vmem:[%s1967_s13 + $0x1] ss:$0 sm:$0xff]  ;;  %s1301_s30 = sshll.u32 %s1515_s10, 4  ;;  %s1302_s30 = int_to_ptr.vmem [resolvable:$true] %s1301_s30 }
 0xd0a   :  { %v1070_v33 = vadd.f32 %v1414_v25, %v1063_v32 }
 0xd0b   :  { %1158 = vmatpush.msrb.mxu0 %v1368_v44 }
 0xd0c   :  { %v1078_v34 = vsel %vm60_vm0, %v1070_v33, 0.0 }
 0xd0d   :  { %1079 = vadd.xlane.f32.xlu2 %v1078_v34  ;;  %1159 = vmatpush.msrb.mxu0 %v1367_v45 }
 0xd0f   :  { %1160 = vmatpush.msrb.mxu0 %v1366_v13 }
 0xd78   :  { %v1077_v35 = vpop.xlane.xlu2 %1076 }
 0xd79   :  { %v1081_v36 = vmul.f32 %v1077_v35, %v1609_v10 }
 0xd7b   :  { %v1083_v37 = vsub.f32 %v1069_v27, %v1081_v36 }
 0xd7d   :  { %v1085_v38 = vmul.f32 %v1083_v37, %v1083_v37 }
 0xd7f   :  { %v1087_v6 = vsel %vm60_vm0, %v1085_v38, 0.0 }
 0xd80   :  { %1088 = vadd.xlane.f32.xlu0 %v1087_v6  ;;  %v1080_v40 = vpop.xlane.xlu2 %1079 }
 0xd81   :  { %v1082_v41 = vmul.f32 %v1080_v40, %v1609_v10 }
 0xd83   :  { %v1084_v61 = vsub.f32 %v1070_v33, %v1082_v41 }
 0xd85   :  { %v1086_v42 = vmul.f32 %v1084_v61, %v1084_v61 }
 0xd87   :  { %v1090_v43 = vsel %vm60_vm0, %v1086_v42, 0.0 }
 0xd88   :  { %1091 = vadd.xlane.f32.xlu2 %v1090_v43 }
 0xdf3   :  { %v1089_v46 = vpop.xlane.xlu0 %1088 }
 0xdf4   :  { %v1093_v47 = vmul.f32 %v1089_v46, %v1609_v10 }
 0xdf6   :  { %v1095_v48 = vadd.f32 1e-12, %v1093_v47 }
 0xdf8   :  { %1471 = vrsqrt.f32 %v1095_v48  ;;  %vm1103_vm9 = vweird.f32 %v1095_v48 }
 0xdfb   :  { %v1092_v49 = vpop.xlane.xlu2 %1091 }
 0xdfc   :  { %v1094_v50 = vmul.f32 %v1092_v49, %v1609_v10 }
 0xdfe   :  { %v1472_v51 = vpop.eup %1471  ;;  %v1096_v52 = vadd.f32 1e-12, %v1094_v50 }
 0xdff   :  { %v1098_v53 = vmul.f32 %v1472_v51, %v1095_v48  ;;  %vm1104_vm8 = vweird.f32 %v1472_v51 }
 0xe00   :  { %1473 = vrsqrt.f32 %v1096_v52  ;;  %vm1105_vm10 = vmor %vm1103_vm9, %vm1104_vm8  ;;  %vm1113_vm12 = vweird.f32 %v1096_v52 }
 0xe01   :  { %v1099_v54 = vmul.f32 %v1472_v51, %v1098_v53 }
 0xe03   :  { %v1100_v56 = vmul.f32 0.5, %v1099_v54 }
 0xe05   :  { %v1101_v57 = vsub.f32 1.5, %v1100_v56 }
 0xe06   :  { %v1474_v58 = vpop.eup %1473 }
 0xe07   :  { %v1102_v59 = vmul.f32 %v1472_v51, %v1101_v57  ;;  %v1108_v60 = vmul.f32 %v1474_v58, %v1096_v52  ;;  %vm1114_vm11 = vweird.f32 %v1474_v58 }
 0xe08   :  { %vm1115_vm13 = vmor %vm1113_vm12, %vm1114_vm11 }
 0xe09   :  { %v1106_v63 = vsel %vm1105_vm10, %v1472_v51, %v1102_v59  ;;  %v1109_v0 = vmul.f32 %v1474_v58, %v1108_v60 }
 0xe0a   :  { %v1117_v1 = vmul.f32 %v1106_v63, %v1083_v37 }
 0xe0b   :  { %v1110_v3 = vmul.f32 0.5, %v1109_v0 }
 0xe0c   :  { %v1122_v4 = vmul.f32 %v1415_v62, %v1117_v1 }
 0xe0d   :  { %v1111_v5 = vsub.f32 1.5, %v1110_v3 }
 0xe0e   :  { %v1127_v7 = vadd.f32 %v1416_v2, %v1122_v4 }
 0xe0f   :  { %v1112_v8 = vmul.f32 %v1474_v58, %v1111_v5 }
 0xe10   :  { %1371 = vmatmul.msk.f32.vlgmr.msrb.gmra.mxu0 %vm60_vm0, %v1127_v7 }
 0xe11   :  { %v1116_v9 = vsel %vm1115_vm13, %v1474_v58, %v1112_v8 }
 0xe12   :  { %v1118_v11 = vmul.f32 %v1116_v9, %v1084_v61 }
 0xe14   :  { %v1123_v12 = vmul.f32 %v1415_v62, %v1118_v11 }
 0xe16   :  { %v1128_v15 = vadd.f32 %v1416_v2, %v1123_v12 }
 0xe18   :  { %1372 = vmatmul.msk.f32.gmra.mxu0 %vm60_vm0, %v1128_v15 }
 0xe8d   :  { %v1162_v23 = vpop.f32.mrf.mxu0 }
 0xe8e   :  { %v1163_v24 = vadd.f32 %v1417_v22, %v1162_v23 }
 0xe90   :  { %v1168_v25 = vmul.f32 %v1163_v24, %v1163_v24 }
 0xe92   :  { %v1170_v26 = vmul.f32 %v1168_v25, %v1163_v24 }
 0xe94   :  { %v1172_v27 = vmul.f32 0.044715, %v1170_v26 }
 0xe95   :  { %v1165_v28 = vpop.f32.mrf.mxu0 }
 0xe96   :  { %v1174_v29 = vadd.f32 %v1172_v27, %v1163_v24  ;;  %v1166_v30 = vadd.f32 %v1417_v22, %v1165_v28 }
 0xe98   :  { %v1176_v31 = vmul.f32 0.7978846, %v1174_v29  ;;  %v1169_v32 = vmul.f32 %v1166_v30, %v1166_v30 }
 0xe9a   :  { %1475 = vtanh.f32 %v1176_v31  ;;  %v1171_v33 = vmul.f32 %v1169_v32, %v1166_v30 }
 0xe9c   :  { %v1173_v34 = vmul.f32 0.044715, %v1171_v33 }
 0xe9e   :  { %v1175_v35 = vadd.f32 %v1173_v34, %v1166_v30 }
 0xea0   :  { %v1476_v36 = vpop.eup %1475  ;;  %v1177_v37 = vmul.f32 0.7978846, %v1175_v35 }
 0xea1   :  { %v1180_v38 = vadd.f32 1.0, %v1476_v36 }
 0xea2   :  { %1477 = vtanh.f32 %v1177_v37 }
 0xea3   :  { %v1182_v6 = vmul.f32 0.5, %v1180_v38 }
 0xea5   :  { %v1184_v40 = vmul.f32 %v1182_v6, %v1163_v24 }
 0xea7   :  { %1382 = vmatmul.msk.f32.vlgmr.msra.gmra.mxu3 %vm613_vm1, %v1184_v40 }
 0xea8   :  { %v1478_v41 = vpop.eup %1477 }
 0xea9   :  { %v1181_v61 = vadd.f32 1.0, %v1478_v41 }
 0xeab   :  { %v1183_v42 = vmul.f32 0.5, %v1181_v61 }
 0xead   :  { %v1185_v43 = vmul.f32 %v1183_v42, %v1166_v30 }
 0xeaf   :  { %1383 = vmatmul.msk.f32.gmra.mxu3 %vm613_vm1, %v1185_v43 }
 0xf2a   :  { %v1223_v44 = vpop.f32.mrf.mxu3 }
 0xf2b   :  { %v1224_v45 = vadd.f32 %v1418_v14, %v1223_v44 }
 0xf2d   :  { %v1229_v13 = vadd.f32 %v1224_v45, %v1127_v7 }
 0xf2f   :  { %v1235_v46 = vsel %vm60_vm0, %v1229_v13, 0.0 }
 0xf30   :  { %1236 = vadd.xlane.f32.xlu2 %v1235_v46 }
 0xf32   :  { %v1226_v47 = vpop.f32.mrf.mxu3 }
 0xf33   :  { %v1227_v48 = vadd.f32 %v1418_v14, %v1226_v47 }
 0xf35   :  { %v1230_v49 = vadd.f32 %v1227_v48, %v1128_v15 }
 0xf37   :  { %v1238_v50 = vsel %vm60_vm0, %v1230_v49, 0.0 }
 0xf38   :  { %1239 = vadd.xlane.f32.xlu1 %v1238_v50 }
 0xfa3   :  { %v1237_v51 = vpop.xlane.xlu2 %1236 }
 0xfa4   :  { %v1241_v54 = vmul.f32 %v1237_v51, %v1609_v10 }
 0xfa6   :  { %v1243_v58 = vsub.f32 %v1229_v13, %v1241_v54 }
 0xfa8   :  { %v1245_v60 = vmul.f32 %v1243_v58, %v1243_v58 }
 0xfaa   :  { %v1247_v62 = vsel %vm60_vm0, %v1245_v60, 0.0 }
 0xfab   :  { %v1240_v52 = vpop.xlane.xlu1 %1239 }
 0xfac   :  { %v1242_v53 = vmul.f32 %v1240_v52, %v1609_v10 }
 0xfae   :  { %v1244_v56 = vsub.f32 %v1230_v49, %v1242_v53 }
 0xfb0   :  { %v1246_v57 = vmul.f32 %v1244_v56, %v1244_v56 }
 0xfb2   :  { %v1250_v59 = vsel %vm60_vm0, %v1246_v57, 0.0 }
 0xfb3   :  { %1251 = vadd.xlane.f32.xlu2 %v1250_v59 }
 0xfbb   :  { %1248 = vadd.xlane.f32.xlu2 %v1247_v62 }
0x1026   :  { %v1252_v63 = vpop.xlane.xlu2 %1251 }
0x1027   :  { %v1254_v0 = vmul.f32 %v1252_v63, %v1609_v10 }
0x1029   :  { %v1256_v1 = vadd.f32 1e-12, %v1254_v0 }
0x102b   :  { %1479 = vrsqrt.f32 %v1256_v1  ;;  %vm1273_vm0 = vweird.f32 %v1256_v1 }
0x102e   :  { %v1249_v2 = vpop.xlane.xlu2 %1248 }
0x102f   :  { %v1253_v3 = vmul.f32 %v1249_v2, %v1609_v10  ;;  %v1419_v10 = vld [vmem:[%s1968_s14 + $0x1] ss:$0 sm:$0xff]  ;;  %s1303_s14 = sshll.u32 %s1970_s16, 4  ;;  %s1304_s14 = int_to_ptr.hbm [resolvable:$true] %s1303_s14 }
0x1031   :  { %v1480_v4 = vpop.eup %1479  ;;  %v1255_v5 = vadd.f32 1e-12, %v1253_v3 }
0x1032   :  { %v1268_v7 = vmul.f32 %v1480_v4, %v1256_v1  ;;  %vm1274_vm14 = vweird.f32 %v1480_v4 }
0x1033   :  { %1481 = vrsqrt.f32 %v1255_v5  ;;  %vm1275_vm15 = vmor %vm1273_vm0, %vm1274_vm14  ;;  %vm1263_vm2 = vweird.f32 %v1255_v5 }
0x1034   :  { %v1269_v8 = vmul.f32 %v1480_v4, %v1268_v7 }
0x1036   :  { %v1270_v9 = vmul.f32 0.5, %v1269_v8 }
0x1038   :  { %v1271_v11 = vsub.f32 1.5, %v1270_v9 }
0x1039   :  { %v1482_v12 = vpop.eup %1481 }
0x103a   :  { %v1272_v15 = vmul.f32 %v1480_v4, %v1271_v11  ;;  %v1258_v16 = vmul.f32 %v1482_v12, %v1255_v5  ;;  %vm1264_vm1 = vweird.f32 %v1482_v12 }
0x103b   :  { %vm1265_vm3 = vmor %vm1263_vm2, %vm1264_vm1 }
0x103c   :  { %v1276_v39 = vsel %vm1275_vm15, %v1480_v4, %v1272_v15  ;;  %v1259_v17 = vmul.f32 %v1482_v12, %v1258_v16 }
0x103d   :  { %v1278_v18 = vmul.f32 %v1276_v39, %v1244_v56 }
0x103e   :  { %v1260_v19 = vmul.f32 0.5, %v1259_v17 }
0x103f   :  { %v1283_v21 = vmul.f32 %v1419_v10, %v1278_v18 }
0x1040   :  { %v1261_v20 = vsub.f32 1.5, %v1260_v19 }
0x1041   :  { %v1288_v25 = vadd.f32 %v1420_v55, %v1283_v21 }
0x1042   :  { %v1262_v22 = vmul.f32 %v1482_v12, %v1261_v20 }
0x1043   :  { %v1290_v28 = vrot.slane %v1288_v25, 7 }
0x1044   :  { %v1266_v23 = vsel %vm1265_vm3, %v1482_v12, %v1262_v22 }
0x1045   :  { %v1277_v24 = vmul.f32 %v1266_v23, %v1243_v58 }
0x1047   :  { %v1282_v26 = vmul.f32 %v1419_v10, %v1277_v24 }
0x1049   :  { %v1287_v27 = vadd.f32 %v1420_v55, %v1282_v26 }
0x104b   :  { %v1293_v29 = vsel %vm1292_vm4, %v1287_v27, %v1290_v28 }
0x104c   :  { %1295 = vst.msk [vmem:[#allocation2] sm:$0x3] %vm1294_vm5, %v1293_v29 }
0x104d   :  { %1306 = dma.vmem_to_hbm [thread:$0]  %s1302_s30, 32, %s1304_s14, [#allocation3]  }
0x104e   :  { %1507 = dma.done.wait [#allocation3], 32  }
0x104f   :  { %1508 = vsyncadd [#allocation3], 4294967264 }
0x1050   :  { %1311 = vsyncpa [#allocation3], 1 }

</bundles_post_ra>
